<compile_context>
chip_gen: v7x
topology: tpu7x:2x2x1
jax: 0.10.0
libtpu: 0.0.40
codegen_flags: <defaults>
</compile_context>

<pallas_src>
import math
import functools

import jax
import jax.numpy as jnp
from jax.experimental import pallas as pl
from jax.experimental.pallas import tpu as pltpu


NEG_INF = -1e30  # finite mask value (avoids 0*inf NaNs in exp/where lowerings)
VMEM_LIMIT = 64 * 1024 * 1024  # explicit scoped-VMEM budget (fits v7x physical)


# ----------------------------------------------------------------------------
# Tiling helpers
# ----------------------------------------------------------------------------

def _tile_and_pad(dim, target, align):
    """Pick a tile size satisfying the (8,128) BlockSpec rule.

    Returns (tile, padded_dim).  If dim <= target the whole dim is one block
    (block == full array dim is always legal).  Otherwise the largest
    align-multiple divisor of dim that is <= target is used; if none exists
    the dim is padded up to a multiple of the aligned target, so we never
    fall back to a multi-hundred-MiB full-dim block (vocab=50257 / odd T safe).
    """
    if dim <= target:
        return dim, dim
    t_max = max((target // align) * align, align)
    t = t_max
    while t >= align:
        if dim % t == 0:
            return t, dim
        t -= align
    padded = ((dim + t_max - 1) // t_max) * t_max
    return t_max, padded


def _pad2d(a, rows, cols):
    pr, pc = rows - a.shape[0], cols - a.shape[1]
    if pr == 0 and pc == 0:
        return a
    return jnp.pad(a, ((0, pr), (0, pc)))


# ----------------------------------------------------------------------------
# Tiled linear: y = x @ W (+ b) (+ tanh-GELU) (+ residual)
# ----------------------------------------------------------------------------

def _make_linear_kernel(activation, has_bias, has_residual, transpose_w, multi_k):
    def kernel(*refs):
        it = iter(refs)
        x_ref = next(it)
        w_ref = next(it)
        b_ref = next(it) if has_bias else None
        r_ref = next(it) if has_residual else None
        o_ref = next(it)
        acc_ref = next(it) if multi_k else None

        def matmul_part():
            # Inputs are already bf16 at rest; MXU accumulates in f32.
            x = x_ref[...]
            w = w_ref[...]
            if transpose_w:
                return jax.lax.dot_general(
                    x, w, (((1,), (1,)), ((), ())),
                    preferred_element_type=jnp.float32)
            return jnp.dot(x, w, preferred_element_type=jnp.float32)

        def epilogue(y):
            # Epilogue math stays in f32 (v5e has no bf16 VPU; correctness).
            if has_bias:
                y = y + b_ref[...].astype(jnp.float32)
            if activation == "gelu_tanh":
                c = math.sqrt(2.0 / math.pi)
                y = 0.5 * y * (1.0 + jnp.tanh(c * (y + 0.044715 * y * y * y)))
            if has_residual:
                y = y + r_ref[...].astype(jnp.float32)
            return y

        if multi_k:
            k = pl.program_id(2)

            @pl.when(k == 0)
            def _():
                acc_ref[...] = jnp.zeros_like(acc_ref)

            acc_ref[...] += matmul_part()

            @pl.when(k == pl.num_programs(2) - 1)
            def _():
                o_ref[...] = epilogue(acc_ref[...]).astype(o_ref.dtype)
        else:
            # K fits in a single tile: no accumulator round trip needed.
            o_ref[...] = epilogue(matmul_part()).astype(o_ref.dtype)

    return kernel


def linear(x2d, w, b=None, activation=None, residual=None, transpose_w=False,
           out_dtype=jnp.bfloat16,
           tm_target=512, tn_target=512, tk_target=4096):
    """y = x2d @ w (+ b) with optional fused tanh-GELU / residual.

    If transpose_w: w is stored [N, K] and contracted transposed (x @ w.T),
    used for the tied lm_head so wte is never transposed in HBM.

    With tk == K (typical at GPT-2 scale) and the K grid axis innermost, the
    x block index (i, 0) is constant across consecutive N steps so Pallas
    elides its DMA and the x panel stays resident across the N sweep.
    """
    M, K = x2d.shape
    if transpose_w:
        N, Kw = w.shape
    else:
        Kw, N = w.shape
    assert Kw == K

    tm, Mp = _tile_and_pad(M, tm_target, 8)
    tn, Np = _tile_and_pad(N, tn_target, 128)
    tk, Kp = _tile_and_pad(K, tk_target, 128)

    x2d = _pad2d(x2d, Mp, Kp)
    if transpose_w:
        w = _pad2d(w, Np, Kp)
    else:
        w = _pad2d(w, Kp, Np)

    grid = (Mp // tm, Np // tn, Kp // tk)
    multi_k = grid[2] > 1

    in_specs = [pl.BlockSpec((tm, tk), lambda i, j, k: (i, k))]
    args = [x2d]
    if transpose_w:
        # TODO(synk): verify via pl.lower_as_mlir that this NT contraction does
        # not insert a per-tile XLU transpose of the (tn, tk) weight block.
        in_specs.append(pl.BlockSpec((tn, tk), lambda i, j, k: (j, k)))
    else:
        in_specs.append(pl.BlockSpec((tk, tn), lambda i, j, k: (k, j)))
    args.append(w)

    has_bias = b is not None
    if has_bias:
        in_specs.append(pl.BlockSpec((1, tn), lambda i, j, k: (0, j)))
        args.append(_pad2d(b.reshape(1, N), 1, Np))

    has_residual = residual is not None
    if has_residual:
        in_specs.append(pl.BlockSpec((tm, tn), lambda i, j, k: (i, j)))
        args.append(_pad2d(residual, Mp, Np))

    kernel = _make_linear_kernel(activation, has_bias, has_residual,
                                 transpose_w, multi_k)
    scratch = [pltpu.VMEM((tm, tn), jnp.float32)] if multi_k else []

    out = pl.pallas_call(
        kernel,
        out_shape=jax.ShapeDtypeStruct((Mp, Np), out_dtype),
        grid=grid,
        in_specs=in_specs,
        out_specs=pl.BlockSpec((tm, tn), lambda i, j, k: (i, j)),
        scratch_shapes=scratch,
        compiler_params=pltpu.CompilerParams(
            dimension_semantics=("parallel", "parallel", "arbitrary"),
            vmem_limit_bytes=VMEM_LIMIT),
    )(*args)

    if Mp != M or Np != N:
        out = out[:M, :N]
    return out


# ----------------------------------------------------------------------------
# Row-tiled LayerNorm (eps=1e-5, matches torch default): bf16 in/out, f32 stats
# ----------------------------------------------------------------------------

def _layernorm_kernel(x_ref, g_ref, b_ref, o_ref):
    x = x_ref[...].astype(jnp.float32)
    mean = jnp.mean(x, axis=-1, keepdims=True)
    xc = x - mean
    var = jnp.mean(xc * xc, axis=-1, keepdims=True)
    inv = jax.lax.rsqrt(var + 1e-5)
    o_ref[...] = (xc * inv * g_ref[...] + b_ref[...]).astype(o_ref.dtype)


def layernorm(x2d, gamma, beta, tm_target=1024):
    # TODO(synk): fuse LN into the prologue of the following linear when
    # tk == K to save one [B*T, C] HBM round trip per LN.
    M, C = x2d.shape
    tm, Mp = _tile_and_pad(M, tm_target, 8)
    x2d = _pad2d(x2d, Mp, C)
    out = pl.pallas_call(
        _layernorm_kernel,
        out_shape=jax.ShapeDtypeStruct((Mp, C), jnp.bfloat16),
        grid=(Mp // tm,),
        in_specs=[
            pl.BlockSpec((tm, C), lambda i: (i, 0)),
            pl.BlockSpec((1, C), lambda i: (0, 0)),
            pl.BlockSpec((1, C), lambda i: (0, 0)),
        ],
        out_specs=pl.BlockSpec((tm, C), lambda i: (i, 0)),
        compiler_params=pltpu.CompilerParams(
            dimension_semantics=("parallel",),
            vmem_limit_bytes=VMEM_LIMIT),
    )(x2d, gamma.reshape(1, C), beta.reshape(1, C))
    if Mp != M:
        out = out[:M]
    return out


# ----------------------------------------------------------------------------
# Flash-style causal attention over [B*H, T, Dh]
# ----------------------------------------------------------------------------

def _flash_attn_kernel(q_ref, k_ref, v_ref, o_ref,
                       m_ref, l_ref, acc_ref, qs_ref, *, scale, tq, tk):
    qi = pl.program_id(1)
    ki = pl.program_id(2)

    @pl.when(ki == 0)
    def _():
        m_ref[...] = jnp.full_like(m_ref, NEG_INF)
        l_ref[...] = jnp.zeros_like(l_ref)
        acc_ref[...] = jnp.zeros_like(acc_ref)
        # Fold 1/sqrt(Dh) into q once per q-tile; keep the scaled bf16 copy
        # resident in VMEM scratch (hoisted out of the kv loop).
        qs_ref[...] = (q_ref[0].astype(jnp.float32) * scale).astype(jnp.bfloat16)

    def step(masked):
        k = k_ref[0]
        v = v_ref[0]
        s = jax.lax.dot_general(
            qs_ref[...], k, (((1,), (1,)), ((), ())),
            preferred_element_type=jnp.float32)        # (tq, tk)
        if masked:
            q_pos = qi * tq + jax.lax.broadcasted_iota(jnp.int32, (tq, tk), 0)
            k_pos = ki * tk + jax.lax.broadcasted_iota(jnp.int32, (tq, tk), 1)
            s = jnp.where(k_pos <= q_pos, s, NEG_INF)
        m_prev = m_ref[...]
        m_new = jnp.maximum(m_prev, jnp.max(s, axis=-1, keepdims=True))
        alpha = jnp.exp(m_prev - m_new)
        p = jnp.exp(s - m_new)
        l_ref[...] = alpha * l_ref[...] + jnp.sum(p, axis=-1, keepdims=True)
        acc_ref[...] = alpha * acc_ref[...] + jnp.dot(
            p.astype(jnp.bfloat16), v, preferred_element_type=jnp.float32)
        m_ref[...] = m_new

    # Strictly-below-diagonal tiles: no causal mask needed (pure VALU saving).
    @pl.when(ki < qi)
    def _():
        step(masked=False)

    # Diagonal tile: masked; it is also the last contributing tile -> finalize.
    @pl.when(ki == qi)
    def _():
        step(masked=True)
        o_ref[0] = (acc_ref[...] / l_ref[...]).astype(o_ref.dtype)


def causal_attention(q, k, v, tile_target=256):
    # TODO(synk): restructure to grid=(BH, n_t) with an in-kernel ki loop
    # (emit_pipeline) to remove the ~44% idle above-diagonal grid steps; with
    # the clamped index_map below their DMAs are already elided.
    BH, T, Dh = q.shape
    scale = 1.0 / math.sqrt(Dh)
    t, Tp = _tile_and_pad(T, tile_target, 8)
    if Tp != T:
        pad = ((0, 0), (0, Tp - T), (0, 0))
        q, k, v = jnp.pad(q, pad), jnp.pad(k, pad), jnp.pad(v, pad)
    n_t = Tp // t

    q_spec = pl.BlockSpec((1, t, Dh), lambda b, qi, ki: (b, qi, 0))
    # Clamp the K/V tile index to the causal range: fully-skipped
    # above-diagonal steps reuse the previous block index, so Pallas elides
    # their HBM DMAs (~2x less K/V traffic).
    kv_spec = pl.BlockSpec((1, t, Dh),
                           lambda b, qi, ki: (b, jnp.minimum(ki, qi), 0))

    out = pl.pallas_call(
        functools.partial(_flash_attn_kernel, scale=scale, tq=t, tk=t),
        out_shape=jax.ShapeDtypeStruct((BH, Tp, Dh), jnp.bfloat16),
        grid=(BH, n_t, n_t),
        in_specs=[q_spec, kv_spec, kv_spec],
        out_specs=q_spec,
        scratch_shapes=[
            pltpu.VMEM((t, 1), jnp.float32),    # m
            pltpu.VMEM((t, 1), jnp.float32),    # l
            pltpu.VMEM((t, Dh), jnp.float32),   # acc
            pltpu.VMEM((t, Dh), jnp.bfloat16),  # scaled q
        ],
        compiler_params=pltpu.CompilerParams(
            dimension_semantics=("parallel", "parallel", "arbitrary"),
            vmem_limit_bytes=VMEM_LIMIT),
    )(q, k, v)

    if Tp != T:
        out = out[:, :T, :]
    return out


# ----------------------------------------------------------------------------
# Model (glue reshapes / gathers in plain JAX; residuals fused into linears)
# ----------------------------------------------------------------------------

def transformer_block(p, x2, B, T, n_head):
    C = x2.shape[1]
    Dh = C // n_head

    # --- attention sub-block ---
    h = layernorm(x2, p["ln1_g"], p["ln1_b"])
    qkv = linear(h, p["attn_w"], p["attn_b"])                # bf16 [B*T, 3C]
    # TODO(synk): emit q/k/v directly as three [B*H, T, Dh] outputs via
    # out_specs index maps to remove these XLA-side transposes entirely
    # (they already move bf16, half the bytes of the previous version).
    qkv = qkv.reshape(B, T, 3, n_head, Dh)
    q = qkv[:, :, 0].transpose(0, 2, 1, 3).reshape(B * n_head, T, Dh)
    k = qkv[:, :, 1].transpose(0, 2, 1, 3).reshape(B * n_head, T, Dh)
    v = qkv[:, :, 2].transpose(0, 2, 1, 3).reshape(B * n_head, T, Dh)
    y = causal_attention(q, k, v)                            # bf16 [B*H, T, Dh]
    y = y.reshape(B, n_head, T, Dh).transpose(0, 2, 1, 3).reshape(B * T, C)
    x2 = linear(y, p["attn_proj_w"], p["attn_proj_b"], residual=x2)

    # --- MLP sub-block (fused bias+GELU in fc, fused residual in proj) ---
    h = layernorm(x2, p["ln2_g"], p["ln2_b"])
    h = linear(h, p["fc_w"], p["fc_b"], activation="gelu_tanh")
    x2 = linear(h, p["mlp_proj_w"], p["mlp_proj_b"], residual=x2)
    return x2


def gpt_forward(params, idx, n_head):
    B, T = idx.shape
    wte = params["wte"]                                      # bf16 [V, C]
    C = wte.shape[1]
    tok_emb = jnp.take(wte, idx, axis=0)                     # [B, T, C] bf16
    pos_emb = params["wpe"][:T]                              # [T, C]  bf16
    x2 = (tok_emb + pos_emb[None, :, :]).reshape(B * T, C).astype(jnp.bfloat16)
    for blk in params["blocks"]:
        x2 = transformer_block(blk, x2, B, T, n_head)
    xf = layernorm(x2, params["ln_f_g"], params["ln_f_b"])
    # Tied lm_head: wte [vocab, C] contracted transposed in-kernel; tk = C so
    # the x panel stays resident across the vocab (N) sweep; logits kept f32.
    logits = linear(xf, wte, b=None, transpose_w=True, out_dtype=jnp.float32)
    return logits.reshape(B, T, wte.shape[0])
    # TODO(synk): cross-entropy loss path (targets is not None) not implemented.


# ----------------------------------------------------------------------------
# Deterministic parameter initialization (mirrors GPT._init_weights)
# Weights stored bf16 at rest (halves HBM traffic); LN params / biases f32.
# ----------------------------------------------------------------------------

def init_params(key, vocab_size, block_size, n_layer, n_head, n_embd):
    std = 0.02
    proj_std = 0.02 * (2 * n_layer) ** -0.5  # only attn.c_proj (NANGPT_SCALE_INIT)
    wdt = jnp.bfloat16
    keys = jax.random.split(key, 2 + n_layer)

    def nrm(k, shape, s):
        return (s * jax.random.normal(k, shape, jnp.float32)).astype(wdt)

    params = {
        "wte": nrm(keys[0], (vocab_size, n_embd), std),
        "wpe": nrm(keys[1], (block_size, n_embd), std),
        "ln_f_g": jnp.ones((n_embd,), jnp.float32),
        "ln_f_b": jnp.zeros((n_embd,), jnp.float32),
        "blocks": [],
    }
    for l in range(n_layer):
        ks = jax.random.split(keys[2 + l], 4)
        blk = {
            "ln1_g": jnp.ones((n_embd,), jnp.float32),
            "ln1_b": jnp.zeros((n_embd,), jnp.float32),
            "attn_w": nrm(ks[0], (n_embd, 3 * n_embd), std),
            "attn_b": jnp.zeros((3 * n_embd,), jnp.float32),
            "attn_proj_w": nrm(ks[1], (n_embd, n_embd), proj_std),
            "attn_proj_b": jnp.zeros((n_embd,), jnp.float32),
            "ln2_g": jnp.ones((n_embd,), jnp.float32),
            "ln2_b": jnp.zeros((n_embd,), jnp.float32),
            "fc_w": nrm(ks[2], (n_embd, 4 * n_embd), std),
            "fc_b": jnp.zeros((4 * n_embd,), jnp.float32),
            # MLP.c_proj sets NANOGPT_SCALE_INIT (typo) -> plain std=0.02 in torch.
            "mlp_proj_w": nrm(ks[3], (4 * n_embd, n_embd), std),
            "mlp_proj_b": jnp.zeros((n_embd,), jnp.float32),
        }
        params["blocks"].append(blk)
    return params


# ----------------------------------------------------------------------------

if __name__ == "__main__":
    # Small config consistent with the module's forward.
    vocab_size, block_size, n_layer, n_head, n_embd = 64, 16, 2, 4, 32
    B, T = 2, 8

    key = jax.random.PRNGKey(0)
    pkey, ikey = jax.random.split(key)
    params = init_params(pkey, vocab_size, block_size, n_layer, n_head, n_embd)
    idx = jax.random.randint(ikey, (B, T), 0, vocab_size, dtype=jnp.int32)

    forward = jax.jit(functools.partial(gpt_forward, n_head=n_head))
    logits = forward(params, idx)
    logits = jax.block_until_ready(logits)
    assert logits.shape == (B, T, vocab_size)
    assert bool(jnp.all(jnp.isfinite(logits)))
    print("KERNEL_OK")
</pallas_src>

<mosaic_0001>
module attributes {stable_mosaic.version = 11 : i64} {
  func.func @_layernorm_kernel(%arg0: i32, %arg1: memref<16x32xbf16, #tpu.memory_space<vmem>>, %arg2: memref<1x32xf32, #tpu.memory_space<vmem>>, %arg3: memref<1x32xf32, #tpu.memory_space<vmem>>, %arg4: memref<16x32xbf16, #tpu.memory_space<vmem>>) attributes {dimension_semantics = [#tpu.dimension_semantics<parallel>], iteration_bounds = array<i64: 1>, scalar_prefetch = 0 : i64, scratch_operands = 0 : i64, tpu.core_type = #tpu.core_type<tc>, window_params = [{transform_indices = @transform_0, window_bounds = array<i64: 16, 32>}, {pipeline_mode = #tpu.pipeline_mode<synchronous>, transform_indices = @transform_1, window_bounds = array<i64: 1, 32>}, {pipeline_mode = #tpu.pipeline_mode<synchronous>, transform_indices = @transform_2, window_bounds = array<i64: 1, 32>}, {transform_indices = @transform_3, window_bounds = array<i64: 16, 32>}]} {
    %c0 = arith.constant 0 : index
    %c0_0 = arith.constant 0 : index
    %0 = vector.load %arg1[%c0, %c0_0] : memref<16x32xbf16, #tpu.memory_space<vmem>>, vector<16x32xbf16>
    %1 = arith.extf %0 : vector<16x32xbf16> to vector<16x32xf32>
    %cst = arith.constant dense<0.000000e+00> : vector<16xf32>
    %2 = vector.multi_reduction <add>, %1, %cst [1] : vector<16x32xf32> to vector<16xf32>
    %3 = vector.shape_cast %2 : vector<16xf32> to vector<16x1xf32>
    %cst_1 = arith.constant 3.200000e+01 : f32
    %4 = vector.broadcast %cst_1 : f32 to vector<16x1xf32>
    %5 = arith.divf %3, %4 : vector<16x1xf32>
    %6 = vector.broadcast %5 : vector<16x1xf32> to vector<16x32xf32>
    %7 = arith.subf %1, %6 : vector<16x32xf32>
    %8 = arith.mulf %7, %7 : vector<16x32xf32>
    %cst_2 = arith.constant dense<0.000000e+00> : vector<16xf32>
    %9 = vector.multi_reduction <add>, %8, %cst_2 [1] : vector<16x32xf32> to vector<16xf32>
    %10 = vector.shape_cast %9 : vector<16xf32> to vector<16x1xf32>
    %cst_3 = arith.constant 3.200000e+01 : f32
    %11 = vector.broadcast %cst_3 : f32 to vector<16x1xf32>
    %12 = arith.divf %10, %11 : vector<16x1xf32>
    %cst_4 = arith.constant 9.99999974E-6 : f32
    %13 = vector.broadcast %cst_4 : f32 to vector<16x1xf32>
    %14 = arith.addf %12, %13 : vector<16x1xf32>
    %15 = math.rsqrt %14 : vector<16x1xf32>
    %16 = vector.broadcast %15 : vector<16x1xf32> to vector<16x32xf32>
    %17 = arith.mulf %7, %16 : vector<16x32xf32>
    %c0_5 = arith.constant 0 : index
    %c0_6 = arith.constant 0 : index
    %18 = vector.load %arg2[%c0_5, %c0_6] : memref<1x32xf32, #tpu.memory_space<vmem>>, vector<1x32xf32>
    %19 = vector.broadcast %18 : vector<1x32xf32> to vector<16x32xf32>
    %20 = arith.mulf %17, %19 : vector<16x32xf32>
    %c0_7 = arith.constant 0 : index
    %c0_8 = arith.constant 0 : index
    %21 = vector.load %arg3[%c0_7, %c0_8] : memref<1x32xf32, #tpu.memory_space<vmem>>, vector<1x32xf32>
    %22 = vector.broadcast %21 : vector<1x32xf32> to vector<16x32xf32>
    %23 = arith.addf %20, %22 : vector<16x32xf32>
    %24 = arith.truncf %23 : vector<16x32xf32> to vector<16x32xbf16>
    %c0_9 = arith.constant 0 : index
    %c0_10 = arith.constant 0 : index
    %25 = vector.load %arg4[%c0_9, %c0_10] : memref<16x32xbf16, #tpu.memory_space<vmem>>, vector<16x32xbf16>
    tpu.vector_store %arg4[%c0_9, %c0_10], %24 {strides = array<i32>} : memref<16x32xbf16, #tpu.memory_space<vmem>>, vector<16x32xbf16>,
    return
  }
  func.func @transform_0(%arg0: i32) -> (i32, i32) {
    %c0_i32 = arith.constant 0 : i32
    %c0_i32_0 = arith.constant 0 : i32
    return %arg0, %c0_i32 : i32, i32
  }
  func.func @transform_1(%arg0: i32) -> (i32, i32) {
    %c0_i32 = arith.constant 0 : i32
    %c0_i32_0 = arith.constant 0 : i32
    %c0_i32_1 = arith.constant 0 : i32
    return %c0_i32, %c0_i32_0 : i32, i32
  }
  func.func @transform_2(%arg0: i32) -> (i32, i32) {
    %c0_i32 = arith.constant 0 : i32
    %c0_i32_0 = arith.constant 0 : i32
    %c0_i32_1 = arith.constant 0 : i32
    return %c0_i32, %c0_i32_0 : i32, i32
  }
  func.func @transform_3(%arg0: i32) -> (i32, i32) {
    %c0_i32 = arith.constant 0 : i32
    %c0_i32_0 = arith.constant 0 : i32
    return %arg0, %c0_i32 : i32, i32
  }
}

module attributes {stable_mosaic.version = 11 : i64} {
  func.func @kernel(%arg0: i32, %arg1: i32, %arg2: i32, %arg3: memref<16x32xbf16, #tpu.memory_space<vmem>>, %arg4: memref<32x96xbf16, #tpu.memory_space<vmem>>, %arg5: memref<1x96xf32, #tpu.memory_space<vmem>>, %arg6: memref<16x96xbf16, #tpu.memory_space<vmem>>) attributes {dimension_semantics = [#tpu.dimension_semantics<parallel>, #tpu.dimension_semantics<parallel>, #tpu.dimension_semantics<arbitrary>], iteration_bounds = array<i64: 1, 1, 1>, scalar_prefetch = 0 : i64, scratch_operands = 0 : i64, tpu.core_type = #tpu.core_type<tc>, window_params = [{transform_indices = @transform_0, window_bounds = array<i64: 16, 32>}, {transform_indices = @transform_1, window_bounds = array<i64: 32, 96>}, {transform_indices = @transform_2, window_bounds = array<i64: 1, 96>}, {transform_indices = @transform_3, window_bounds = array<i64: 16, 96>}]} {
    %c0 = arith.constant 0 : index
    %c0_0 = arith.constant 0 : index
    %0 = vector.load %arg3[%c0, %c0_0] : memref<16x32xbf16, #tpu.memory_space<vmem>>, vector<16x32xbf16>
    %c0_1 = arith.constant 0 : index
    %c0_2 = arith.constant 0 : index
    %1 = vector.load %arg4[%c0_1, %c0_2] : memref<32x96xbf16, #tpu.memory_space<vmem>>, vector<32x96xbf16>
    %cst = arith.constant dense<0.000000e+00> : vector<16x96xf32>
    %2 = tpu.matmul %0, %1, %cst {dimension_numbers = #tpu.dot_dimension_numbers<[1], [0], [0], [1], [0, 0, 1, 1], [], []>} : vector<16x32xbf16>, vector<32x96xbf16>, vector<16x96xf32> -> vector<16x96xf32>
    %c0_3 = arith.constant 0 : index
    %c0_4 = arith.constant 0 : index
    %3 = vector.load %arg5[%c0_3, %c0_4] : memref<1x96xf32, #tpu.memory_space<vmem>>, vector<1x96xf32>
    %4 = vector.broadcast %3 : vector<1x96xf32> to vector<16x96xf32>
    %5 = arith.addf %2, %4 : vector<16x96xf32>
    %6 = arith.truncf %5 : vector<16x96xf32> to vector<16x96xbf16>
    %c0_5 = arith.constant 0 : index
    %c0_6 = arith.constant 0 : index
    %7 = vector.load %arg6[%c0_5, %c0_6] : memref<16x96xbf16, #tpu.memory_space<vmem>>, vector<16x96xbf16>
    tpu.vector_store %arg6[%c0_5, %c0_6], %6 {strides = array<i32>} : memref<16x96xbf16, #tpu.memory_space<vmem>>, vector<16x96xbf16>,
    return
  }
  func.func @transform_0(%arg0: i32, %arg1: i32, %arg2: i32) -> (i32, i32) {
    %c0_i32 = arith.constant 0 : i32
    return %arg0, %arg2 : i32, i32
  }
  func.func @transform_1(%arg0: i32, %arg1: i32, %arg2: i32) -> (i32, i32) {
    %c0_i32 = arith.constant 0 : i32
    return %arg2, %arg1 : i32, i32
  }
  func.func @transform_2(%arg0: i32, %arg1: i32, %arg2: i32) -> (i32, i32) {
    %c0_i32 = arith.constant 0 : i32
    %c0_i32_0 = arith.constant 0 : i32
    return %c0_i32, %arg1 : i32, i32
  }
  func.func @transform_3(%arg0: i32, %arg1: i32, %arg2: i32) -> (i32, i32) {
    %c0_i32 = arith.constant 0 : i32
    return %arg0, %arg1 : i32, i32
  }
}

module attributes {stable_mosaic.version = 11 : i64} {
  func.func @_flash_attn_kernel(%arg0: i32, %arg1: i32, %arg2: i32, %arg3: memref<1x8x8xbf16, #tpu.memory_space<vmem>>, %arg4: memref<1x8x8xbf16, #tpu.memory_space<vmem>>, %arg5: memref<1x8x8xbf16, #tpu.memory_space<vmem>>, %arg6: memref<1x8x8xbf16, #tpu.memory_space<vmem>>, %arg7: memref<8x1xf32, #tpu.memory_space<vmem>>, %arg8: memref<8x1xf32, #tpu.memory_space<vmem>>, %arg9: memref<8x8xf32, #tpu.memory_space<vmem>>, %arg10: memref<8x8xbf16, #tpu.memory_space<vmem>>) attributes {dimension_semantics = [#tpu.dimension_semantics<parallel>, #tpu.dimension_semantics<parallel>, #tpu.dimension_semantics<arbitrary>], iteration_bounds = array<i64: 8, 1, 1>, scalar_prefetch = 0 : i64, scratch_operands = 4 : i64, tpu.core_type = #tpu.core_type<tc>, window_params = [{transform_indices = @transform_0, window_bounds = array<i64: 1, 8, 8>}, {transform_indices = @transform_1, window_bounds = array<i64: 1, 8, 8>}, {transform_indices = @transform_2, window_bounds = array<i64: 1, 8, 8>}, {transform_indices = @transform_3, window_bounds = array<i64: 1, 8, 8>}]} {
    %c0_i32 = arith.constant 0 : i32
    %0 = arith.cmpi eq, %arg2, %c0_i32 : i32
    %1 = arith.extui %0 : i1 to i32
    %c0_i32_0 = arith.constant 0 : i32
    %2 = arith.cmpi ne, %1, %c0_i32_0 : i32
    scf.if %2 {
      %cst = arith.constant -1.000000e+30 : f32
      %9 = vector.broadcast %cst : f32 to vector<8x1xf32>
      %c0 = arith.constant 0 : index
      %c0_3 = arith.constant 0 : index
      %10 = vector.load %arg7[%c0, %c0_3] : memref<8x1xf32, #tpu.memory_space<vmem>>, vector<8x1xf32>
      tpu.vector_store %arg7[%c0, %c0_3], %9 {strides = array<i32>} : memref<8x1xf32, #tpu.memory_space<vmem>>, vector<8x1xf32>,
      %cst_4 = arith.constant 0.000000e+00 : f32
      %11 = vector.broadcast %cst_4 : f32 to vector<8x1xf32>
      %c0_5 = arith.constant 0 : index
      %c0_6 = arith.constant 0 : index
      %12 = vector.load %arg8[%c0_5, %c0_6] : memref<8x1xf32, #tpu.memory_space<vmem>>, vector<8x1xf32>
      tpu.vector_store %arg8[%c0_5, %c0_6], %11 {strides = array<i32>} : memref<8x1xf32, #tpu.memory_space<vmem>>, vector<8x1xf32>,
      %cst_7 = arith.constant 0.000000e+00 : f32
      %13 = vector.broadcast %cst_7 : f32 to vector<8x8xf32>
      %c0_8 = arith.constant 0 : index
      %c0_9 = arith.constant 0 : index
      %14 = vector.load %arg9[%c0_8, %c0_9] : memref<8x8xf32, #tpu.memory_space<vmem>>, vector<8x8xf32>
      tpu.vector_store %arg9[%c0_8, %c0_9], %13 {strides = array<i32>} : memref<8x8xf32, #tpu.memory_space<vmem>>, vector<8x8xf32>,
      %c0_10 = arith.constant 0 : index
      %c0_11 = arith.constant 0 : index
      %c0_12 = arith.constant 0 : index
      %15 = vector.load %arg3[%c0_10, %c0_11, %c0_12] : memref<1x8x8xbf16, #tpu.memory_space<vmem>>, vector<1x8x8xbf16>
      %16 = vector.shape_cast %15 : vector<1x8x8xbf16> to vector<8x8xbf16>
      %17 = arith.extf %16 : vector<8x8xbf16> to vector<8x8xf32>
      %cst_13 = arith.constant 0.353553385 : f32
      %18 = vector.broadcast %cst_13 : f32 to vector<8x8xf32>
      %19 = arith.mulf %17, %18 : vector<8x8xf32>
      %20 = arith.truncf %19 : vector<8x8xf32> to vector<8x8xbf16>
      %c0_14 = arith.constant 0 : index
      %c0_15 = arith.constant 0 : index
      %21 = vector.load %arg10[%c0_14, %c0_15] : memref<8x8xbf16, #tpu.memory_space<vmem>>, vector<8x8xbf16>
      tpu.vector_store %arg10[%c0_14, %c0_15], %20 {strides = array<i32>} : memref<8x8xbf16, #tpu.memory_space<vmem>>, vector<8x8xbf16>,
    } else {
    }
    %3 = arith.cmpi slt, %arg2, %arg1 : i32
    %4 = arith.extui %3 : i1 to i32
    %c0_i32_1 = arith.constant 0 : i32
    %5 = arith.cmpi ne, %4, %c0_i32_1 : i32
    scf.if %5 {
      %c0 = arith.constant 0 : index
      %c0_3 = arith.constant 0 : index
      %c0_4 = arith.constant 0 : index
      %9 = vector.load %arg4[%c0, %c0_3, %c0_4] : memref<1x8x8xbf16, #tpu.memory_space<vmem>>, vector<1x8x8xbf16>
      %10 = vector.shape_cast %9 : vector<1x8x8xbf16> to vector<8x8xbf16>
      %c0_5 = arith.constant 0 : index
      %c0_6 = arith.constant 0 : index
      %c0_7 = arith.constant 0 : index
      %11 = vector.load %arg5[%c0_5, %c0_6, %c0_7] : memref<1x8x8xbf16, #tpu.memory_space<vmem>>, vector<1x8x8xbf16>
      %12 = vector.shape_cast %11 : vector<1x8x8xbf16> to vector<8x8xbf16>
      %c0_8 = arith.constant 0 : index
      %c0_9 = arith.constant 0 : index
      %13 = vector.load %arg10[%c0_8, %c0_9] : memref<8x8xbf16, #tpu.memory_space<vmem>>, vector<8x8xbf16>
      %cst = arith.constant dense<0.000000e+00> : vector<8x8xf32>
      %14 = tpu.matmul %13, %10, %cst {dimension_numbers = #tpu.dot_dimension_numbers<[1], [1], [0], [0], [0, 0, 1, 0], [], []>} : vector<8x8xbf16>, vector<8x8xbf16>, vector<8x8xf32> -> vector<8x8xf32>
      %c0_10 = arith.constant 0 : index
      %c0_11 = arith.constant 0 : index
      %15 = vector.load %arg7[%c0_10, %c0_11] : memref<8x1xf32, #tpu.memory_space<vmem>>, vector<8x1xf32>
      %cst_12 = arith.constant dense<0xFF800000> : vector<8xf32>
      %16 = vector.multi_reduction <maximumf>, %14, %cst_12 [1] : vector<8x8xf32> to vector<8xf32>
      %17 = vector.shape_cast %16 : vector<8xf32> to vector<8x1xf32>
      %18 = arith.maximumf %15, %17 : vector<8x1xf32>
      %19 = arith.subf %15, %18 : vector<8x1xf32>
      %20 = math.exp %19 : vector<8x1xf32>
      %21 = vector.broadcast %18 : vector<8x1xf32> to vector<8x8xf32>
      %22 = arith.subf %14, %21 : vector<8x8xf32>
      %23 = math.exp %22 : vector<8x8xf32>
      %c0_13 = arith.constant 0 : index
      %c0_14 = arith.constant 0 : index
      %24 = vector.load %arg8[%c0_13, %c0_14] : memref<8x1xf32, #tpu.memory_space<vmem>>, vector<8x1xf32>
      %25 = arith.mulf %20, %24 : vector<8x1xf32>
      %cst_15 = arith.constant dense<0.000000e+00> : vector<8xf32>
      %26 = vector.multi_reduction <add>, %23, %cst_15 [1] : vector<8x8xf32> to vector<8xf32>
      %27 = vector.shape_cast %26 : vector<8xf32> to vector<8x1xf32>
      %28 = arith.addf %25, %27 : vector<8x1xf32>
      %c0_16 = arith.constant 0 : index
      %c0_17 = arith.constant 0 : index
      %29 = vector.load %arg8[%c0_16, %c0_17] : memref<8x1xf32, #tpu.memory_space<vmem>>, vector<8x1xf32>
      tpu.vector_store %arg8[%c0_16, %c0_17], %28 {strides = array<i32>} : memref<8x1xf32, #tpu.memory_space<vmem>>, vector<8x1xf32>,
      %c0_18 = arith.constant 0 : index
      %c0_19 = arith.constant 0 : index
      %30 = vector.load %arg9[%c0_18, %c0_19] : memref<8x8xf32, #tpu.memory_space<vmem>>, vector<8x8xf32>
      %31 = vector.broadcast %20 : vector<8x1xf32> to vector<8x8xf32>
      %32 = arith.mulf %31, %30 : vector<8x8xf32>
      %33 = arith.truncf %23 : vector<8x8xf32> to vector<8x8xbf16>
      %cst_20 = arith.constant dense<0.000000e+00> : vector<8x8xf32>
      %34 = tpu.matmul %33, %12, %cst_20 {dimension_numbers = #tpu.dot_dimension_numbers<[1], [0], [0], [1], [0, 0, 1, 1], [], []>} : vector<8x8xbf16>, vector<8x8xbf16>, vector<8x8xf32> -> vector<8x8xf32>
      %35 = arith.addf %32, %34 : vector<8x8xf32>
      %c0_21 = arith.constant 0 : index
      %c0_22 = arith.constant 0 : index
      %36 = vector.load %arg9[%c0_21, %c0_22] : memref<8x8xf32, #tpu.memory_space<vmem>>, vector<8x8xf32>
      tpu.vector_store %arg9[%c0_21, %c0_22], %35 {strides = array<i32>} : memref<8x8xf32, #tpu.memory_space<vmem>>, vector<8x8xf32>,
      %c0_23 = arith.constant 0 : index
      %c0_24 = arith.constant 0 : index
      %37 = vector.load %arg7[%c0_23, %c0_24] : memref<8x1xf32, #tpu.memory_space<vmem>>, vector<8x1xf32>
      tpu.vector_store %arg7[%c0_23, %c0_24], %18 {strides = array<i32>} : memref<8x1xf32, #tpu.memory_space<vmem>>, vector<8x1xf32>,
    } else {
    }
    %6 = arith.cmpi eq, %arg2, %arg1 : i32
    %7 = arith.extui %6 : i1 to i32
    %c0_i32_2 = arith.constant 0 : i32
    %8 = arith.cmpi ne, %7, %c0_i32_2 : i32
    scf.if %8 {
      %c0 = arith.constant 0 : index
      %c0_3 = arith.constant 0 : index
      %c0_4 = arith.constant 0 : index
      %9 = vector.load %arg4[%c0, %c0_3, %c0_4] : memref<1x8x8xbf16, #tpu.memory_space<vmem>>, vector<1x8x8xbf16>
      %10 = vector.shape_cast %9 : vector<1x8x8xbf16> to vector<8x8xbf16>
      %c0_5 = arith.constant 0 : index
      %c0_6 = arith.constant 0 : index
      %c0_7 = arith.constant 0 : index
      %11 = vector.load %arg5[%c0_5, %c0_6, %c0_7] : memref<1x8x8xbf16, #tpu.memory_space<vmem>>, vector<1x8x8xbf16>
      %12 = vector.shape_cast %11 : vector<1x8x8xbf16> to vector<8x8xbf16>
      %c0_8 = arith.constant 0 : index
      %c0_9 = arith.constant 0 : index
      %13 = vector.load %arg10[%c0_8, %c0_9] : memref<8x8xbf16, #tpu.memory_space<vmem>>, vector<8x8xbf16>
      %cst = arith.constant dense<0.000000e+00> : vector<8x8xf32>
      %14 = tpu.matmul %13, %10, %cst {dimension_numbers = #tpu.dot_dimension_numbers<[1], [1], [0], [0], [0, 0, 1, 0], [], []>} : vector<8x8xbf16>, vector<8x8xbf16>, vector<8x8xf32> -> vector<8x8xf32>
      %c8_i32 = arith.constant 8 : i32
      %15 = arith.muli %arg1, %c8_i32 : i32
      %16 = tpu.iota {dimensions = array<i32: 0>} : vector<8x8xi32>
      %17 = vector.broadcast %15 : i32 to vector<8x8xi32>
      %18 = arith.addi %17, %16 : vector<8x8xi32>
      %c8_i32_10 = arith.constant 8 : i32
      %19 = arith.muli %arg2, %c8_i32_10 : i32
      %20 = tpu.iota {dimensions = array<i32: 1>} : vector<8x8xi32>
      %21 = vector.broadcast %19 : i32 to vector<8x8xi32>
      %22 = arith.addi %21, %20 : vector<8x8xi32>
      %23 = arith.cmpi sle, %22, %18 : vector<8x8xi32>
      %cst_11 = arith.constant -1.000000e+30 : f32
      %24 = vector.broadcast %cst_11 : f32 to vector<8x8xf32>
      %25 = arith.select %23, %14, %24 : vector<8x8xi1>, vector<8x8xf32>
      %c0_12 = arith.constant 0 : index
      %c0_13 = arith.constant 0 : index
      %26 = vector.load %arg7[%c0_12, %c0_13] : memref<8x1xf32, #tpu.memory_space<vmem>>, vector<8x1xf32>
      %cst_14 = arith.constant dense<0xFF800000> : vector<8xf32>
      %27 = vector.multi_reduction <maximumf>, %25, %cst_14 [1] : vector<8x8xf32> to vector<8xf32>
      %28 = vector.shape_cast %27 : vector<8xf32> to vector<8x1xf32>
      %29 = arith.maximumf %26, %28 : vector<8x1xf32>
      %30 = arith.subf %26, %29 : vector<8x1xf32>
      %31 = math.exp %30 : vector<8x1xf32>
      %32 = vector.broadcast %29 : vector<8x1xf32> to vector<8x8xf32>
      %33 = arith.subf %25, %32 : vector<8x8xf32>
      %34 = math.exp %33 : vector<8x8xf32>
      %c0_15 = arith.constant 0 : index
      %c0_16 = arith.constant 0 : index
      %35 = vector.load %arg8[%c0_15, %c0_16] : memref<8x1xf32, #tpu.memory_space<vmem>>, vector<8x1xf32>
      %36 = arith.mulf %31, %35 : vector<8x1xf32>
      %cst_17 = arith.constant dense<0.000000e+00> : vector<8xf32>
      %37 = vector.multi_reduction <add>, %34, %cst_17 [1] : vector<8x8xf32> to vector<8xf32>
      %38 = vector.shape_cast %37 : vector<8xf32> to vector<8x1xf32>
      %39 = arith.addf %36, %38 : vector<8x1xf32>
      %c0_18 = arith.constant 0 : index
      %c0_19 = arith.constant 0 : index
      %40 = vector.load %arg8[%c0_18, %c0_19] : memref<8x1xf32, #tpu.memory_space<vmem>>, vector<8x1xf32>
      tpu.vector_store %arg8[%c0_18, %c0_19], %39 {strides = array<i32>} : memref<8x1xf32, #tpu.memory_space<vmem>>, vector<8x1xf32>,
      %c0_20 = arith.constant 0 : index
      %c0_21 = arith.constant 0 : index
      %41 = vector.load %arg9[%c0_20, %c0_21] : memref<8x8xf32, #tpu.memory_space<vmem>>, vector<8x8xf32>
      %42 = vector.broadcast %31 : vector<8x1xf32> to vector<8x8xf32>
      %43 = arith.mulf %42, %41 : vector<8x8xf32>
      %44 = arith.truncf %34 : vector<8x8xf32> to vector<8x8xbf16>
      %cst_22 = arith.constant dense<0.000000e+00> : vector<8x8xf32>
      %45 = tpu.matmul %44, %12, %cst_22 {dimension_numbers = #tpu.dot_dimension_numbers<[1], [0], [0], [1], [0, 0, 1, 1], [], []>} : vector<8x8xbf16>, vector<8x8xbf16>, vector<8x8xf32> -> vector<8x8xf32>
      %46 = arith.addf %43, %45 : vector<8x8xf32>
      %c0_23 = arith.constant 0 : index
      %c0_24 = arith.constant 0 : index
      %47 = vector.load %arg9[%c0_23, %c0_24] : memref<8x8xf32, #tpu.memory_space<vmem>>, vector<8x8xf32>
      tpu.vector_store %arg9[%c0_23, %c0_24], %46 {strides = array<i32>} : memref<8x8xf32, #tpu.memory_space<vmem>>, vector<8x8xf32>,
      %c0_25 = arith.constant 0 : index
      %c0_26 = arith.constant 0 : index
      %48 = vector.load %arg7[%c0_25, %c0_26] : memref<8x1xf32, #tpu.memory_space<vmem>>, vector<8x1xf32>
      tpu.vector_store %arg7[%c0_25, %c0_26], %29 {strides = array<i32>} : memref<8x1xf32, #tpu.memory_space<vmem>>, vector<8x1xf32>,
      %c0_27 = arith.constant 0 : index
      %c0_28 = arith.constant 0 : index
      %49 = vector.load %arg9[%c0_27, %c0_28] : memref<8x8xf32, #tpu.memory_space<vmem>>, vector<8x8xf32>
      %c0_29 = arith.constant 0 : index
      %c0_30 = arith.constant 0 : index
      %50 = vector.load %arg8[%c0_29, %c0_30] : memref<8x1xf32, #tpu.memory_space<vmem>>, vector<8x1xf32>
      %51 = vector.broadcast %50 : vector<8x1xf32> to vector<8x8xf32>
      %52 = arith.divf %49, %51 : vector<8x8xf32>
      %53 = arith.truncf %52 : vector<8x8xf32> to vector<8x8xbf16>
      %c0_31 = arith.constant 0 : index
      %c0_32 = arith.constant 0 : index
      %c0_33 = arith.constant 0 : index
      %54 = vector.load %arg6[%c0_31, %c0_32, %c0_33] : memref<1x8x8xbf16, #tpu.memory_space<vmem>>, vector<1x8x8xbf16>
      %55 = vector.shape_cast %54 : vector<1x8x8xbf16> to vector<8x8xbf16>
      %56 = vector.shape_cast %53 : vector<8x8xbf16> to vector<1x8x8xbf16>
      tpu.vector_store %arg6[%c0_31, %c0_32, %c0_33], %56 {strides = array<i32>} : memref<1x8x8xbf16, #tpu.memory_space<vmem>>, vector<1x8x8xbf16>,
    } else {
    }
    return
  }
  func.func @transform_0(%arg0: i32, %arg1: i32, %arg2: i32) -> (i32, i32, i32) {
    %c0_i32 = arith.constant 0 : i32
    %c0_i32_0 = arith.constant 0 : i32
    return %arg0, %arg1, %c0_i32 : i32, i32, i32
  }
  func.func @transform_1(%arg0: i32, %arg1: i32, %arg2: i32) -> (i32, i32, i32) {
    %0 = arith.minsi %arg2, %arg1 : i32
    %c0_i32 = arith.constant 0 : i32
    %c0_i32_0 = arith.constant 0 : i32
    return %arg0, %0, %c0_i32 : i32, i32, i32
  }
  func.func @transform_2(%arg0: i32, %arg1: i32, %arg2: i32) -> (i32, i32, i32) {
    %0 = arith.minsi %arg2, %arg1 : i32
    %c0_i32 = arith.constant 0 : i32
    %c0_i32_0 = arith.constant 0 : i32
    return %arg0, %0, %c0_i32 : i32, i32, i32
  }
  func.func @transform_3(%arg0: i32, %arg1: i32, %arg2: i32) -> (i32, i32, i32) {
    %c0_i32 = arith.constant 0 : i32
    %c0_i32_0 = arith.constant 0 : i32
    return %arg0, %arg1, %c0_i32 : i32, i32, i32
  }
}

module attributes {stable_mosaic.version = 11 : i64} {
  func.func @kernel(%arg0: i32, %arg1: i32, %arg2: i32, %arg3: memref<16x32xbf16, #tpu.memory_space<vmem>>, %arg4: memref<32x32xbf16, #tpu.memory_space<vmem>>, %arg5: memref<1x32xf32, #tpu.memory_space<vmem>>, %arg6: memref<16x32xbf16, #tpu.memory_space<vmem>>, %arg7: memref<16x32xbf16, #tpu.memory_space<vmem>>) attributes {dimension_semantics = [#tpu.dimension_semantics<parallel>, #tpu.dimension_semantics<parallel>, #tpu.dimension_semantics<arbitrary>], iteration_bounds = array<i64: 1, 1, 1>, scalar_prefetch = 0 : i64, scratch_operands = 0 : i64, tpu.core_type = #tpu.core_type<tc>, window_params = [{transform_indices = @transform_0, window_bounds = array<i64: 16, 32>}, {transform_indices = @transform_1, window_bounds = array<i64: 32, 32>}, {transform_indices = @transform_2, window_bounds = array<i64: 1, 32>}, {transform_indices = @transform_3, window_bounds = array<i64: 16, 32>}, {transform_indices = @transform_4, window_bounds = array<i64: 16, 32>}]} {
    %c0 = arith.constant 0 : index
    %c0_0 = arith.constant 0 : index
    %0 = vector.load %arg3[%c0, %c0_0] : memref<16x32xbf16, #tpu.memory_space<vmem>>, vector<16x32xbf16>
    %c0_1 = arith.constant 0 : index
    %c0_2 = arith.constant 0 : index
    %1 = vector.load %arg4[%c0_1, %c0_2] : memref<32x32xbf16, #tpu.memory_space<vmem>>, vector<32x32xbf16>
    %cst = arith.constant dense<0.000000e+00> : vector<16x32xf32>
    %2 = tpu.matmul %0, %1, %cst {dimension_numbers = #tpu.dot_dimension_numbers<[1], [0], [0], [1], [0, 0, 1, 1], [], []>} : vector<16x32xbf16>, vector<32x32xbf16>, vector<16x32xf32> -> vector<16x32xf32>
    %c0_3 = arith.constant 0 : index
    %c0_4 = arith.constant 0 : index
    %3 = vector.load %arg5[%c0_3, %c0_4] : memref<1x32xf32, #tpu.memory_space<vmem>>, vector<1x32xf32>
    %4 = vector.broadcast %3 : vector<1x32xf32> to vector<16x32xf32>
    %5 = arith.addf %2, %4 : vector<16x32xf32>
    %c0_5 = arith.constant 0 : index
    %c0_6 = arith.constant 0 : index
    %6 = vector.load %arg6[%c0_5, %c0_6] : memref<16x32xbf16, #tpu.memory_space<vmem>>, vector<16x32xbf16>
    %7 = arith.extf %6 : vector<16x32xbf16> to vector<16x32xf32>
    %8 = arith.addf %5, %7 : vector<16x32xf32>
    %9 = arith.truncf %8 : vector<16x32xf32> to vector<16x32xbf16>
    %c0_7 = arith.constant 0 : index
    %c0_8 = arith.constant 0 : index
    %10 = vector.load %arg7[%c0_7, %c0_8] : memref<16x32xbf16, #tpu.memory_space<vmem>>, vector<16x32xbf16>
    tpu.vector_store %arg7[%c0_7, %c0_8], %9 {strides = array<i32>} : memref<16x32xbf16, #tpu.memory_space<vmem>>, vector<16x32xbf16>,
    return
  }
  func.func @transform_0(%arg0: i32, %arg1: i32, %arg2: i32) -> (i32, i32) {
    %c0_i32 = arith.constant 0 : i32
    return %arg0, %arg2 : i32, i32
  }
  func.func @transform_1(%arg0: i32, %arg1: i32, %arg2: i32) -> (i32, i32) {
    %c0_i32 = arith.constant 0 : i32
    return %arg2, %arg1 : i32, i32
  }
  func.func @transform_2(%arg0: i32, %arg1: i32, %arg2: i32) -> (i32, i32) {
    %c0_i32 = arith.constant 0 : i32
    %c0_i32_0 = arith.constant 0 : i32
    return %c0_i32, %arg1 : i32, i32
  }
  func.func @transform_3(%arg0: i32, %arg1: i32, %arg2: i32) -> (i32, i32) {
    %c0_i32 = arith.constant 0 : i32
    return %arg0, %arg1 : i32, i32
  }
  func.func @transform_4(%arg0: i32, %arg1: i32, %arg2: i32) -> (i32, i32) {
    %c0_i32 = arith.constant 0 : i32
    return %arg0, %arg1 : i32, i32
  }
}

module attributes {stable_mosaic.version = 11 : i64} {
  func.func @kernel(%arg0: i32, %arg1: i32, %arg2: i32, %arg3: memref<16x32xbf16, #tpu.memory_space<vmem>>, %arg4: memref<32x128xbf16, #tpu.memory_space<vmem>>, %arg5: memref<1x128xf32, #tpu.memory_space<vmem>>, %arg6: memref<16x128xbf16, #tpu.memory_space<vmem>>) attributes {dimension_semantics = [#tpu.dimension_semantics<parallel>, #tpu.dimension_semantics<parallel>, #tpu.dimension_semantics<arbitrary>], iteration_bounds = array<i64: 1, 1, 1>, scalar_prefetch = 0 : i64, scratch_operands = 0 : i64, tpu.core_type = #tpu.core_type<tc>, window_params = [{transform_indices = @transform_0, window_bounds = array<i64: 16, 32>}, {transform_indices = @transform_1, window_bounds = array<i64: 32, 128>}, {transform_indices = @transform_2, window_bounds = array<i64: 1, 128>}, {transform_indices = @transform_3, window_bounds = array<i64: 16, 128>}]} {
    %c0 = arith.constant 0 : index
    %c0_0 = arith.constant 0 : index
    %0 = vector.load %arg3[%c0, %c0_0] : memref<16x32xbf16, #tpu.memory_space<vmem>>, vector<16x32xbf16>
    %c0_1 = arith.constant 0 : index
    %c0_2 = arith.constant 0 : index
    %1 = vector.load %arg4[%c0_1, %c0_2] : memref<32x128xbf16, #tpu.memory_space<vmem>>, vector<32x128xbf16>
    %cst = arith.constant dense<0.000000e+00> : vector<16x128xf32>
    %2 = tpu.matmul %0, %1, %cst {dimension_numbers = #tpu.dot_dimension_numbers<[1], [0], [0], [1], [0, 0, 1, 1], [], []>} : vector<16x32xbf16>, vector<32x128xbf16>, vector<16x128xf32> -> vector<16x128xf32>
    %c0_3 = arith.constant 0 : index
    %c0_4 = arith.constant 0 : index
    %3 = vector.load %arg5[%c0_3, %c0_4] : memref<1x128xf32, #tpu.memory_space<vmem>>, vector<1x128xf32>
    %4 = vector.broadcast %3 : vector<1x128xf32> to vector<16x128xf32>
    %5 = arith.addf %2, %4 : vector<16x128xf32>
    %cst_5 = arith.constant 5.000000e-01 : f32
    %6 = vector.broadcast %cst_5 : f32 to vector<16x128xf32>
    %7 = arith.mulf %6, %5 : vector<16x128xf32>
    %cst_6 = arith.constant 4.471500e-02 : f32
    %8 = vector.broadcast %cst_6 : f32 to vector<16x128xf32>
    %9 = arith.mulf %8, %5 : vector<16x128xf32>
    %10 = arith.mulf %9, %5 : vector<16x128xf32>
    %11 = arith.mulf %10, %5 : vector<16x128xf32>
    %12 = arith.addf %5, %11 : vector<16x128xf32>
    %cst_7 = arith.constant 0.797884583 : f32
    %13 = vector.broadcast %cst_7 : f32 to vector<16x128xf32>
    %14 = arith.mulf %13, %12 : vector<16x128xf32>
    %15 = math.tanh %14 : vector<16x128xf32>
    %cst_8 = arith.constant 1.000000e+00 : f32
    %16 = vector.broadcast %cst_8 : f32 to vector<16x128xf32>
    %17 = arith.addf %16, %15 : vector<16x128xf32>
    %18 = arith.mulf %7, %17 : vector<16x128xf32>
    %19 = arith.truncf %18 : vector<16x128xf32> to vector<16x128xbf16>
    %c0_9 = arith.constant 0 : index
    %c0_10 = arith.constant 0 : index
    %20 = vector.load %arg6[%c0_9, %c0_10] : memref<16x128xbf16, #tpu.memory_space<vmem>>, vector<16x128xbf16>
    tpu.vector_store %arg6[%c0_9, %c0_10], %19 {strides = array<i32>} : memref<16x128xbf16, #tpu.memory_space<vmem>>, vector<16x128xbf16>,
    return
  }
  func.func @transform_0(%arg0: i32, %arg1: i32, %arg2: i32) -> (i32, i32) {
    %c0_i32 = arith.constant 0 : i32
    return %arg0, %arg2 : i32, i32
  }
  func.func @transform_1(%arg0: i32, %arg1: i32, %arg2: i32) -> (i32, i32) {
    %c0_i32 = arith.constant 0 : i32
    return %arg2, %arg1 : i32, i32
  }
  func.func @transform_2(%arg0: i32, %arg1: i32, %arg2: i32) -> (i32, i32) {
    %c0_i32 = arith.constant 0 : i32
    %c0_i32_0 = arith.constant 0 : i32
    return %c0_i32, %arg1 : i32, i32
  }
  func.func @transform_3(%arg0: i32, %arg1: i32, %arg2: i32) -> (i32, i32) {
    %c0_i32 = arith.constant 0 : i32
    return %arg0, %arg1 : i32, i32
  }
}

module attributes {stable_mosaic.version = 11 : i64} {
  func.func @kernel(%arg0: i32, %arg1: i32, %arg2: i32, %arg3: memref<16x128xbf16, #tpu.memory_space<vmem>>, %arg4: memref<128x32xbf16, #tpu.memory_space<vmem>>, %arg5: memref<1x32xf32, #tpu.memory_space<vmem>>, %arg6: memref<16x32xbf16, #tpu.memory_space<vmem>>, %arg7: memref<16x32xbf16, #tpu.memory_space<vmem>>) attributes {dimension_semantics = [#tpu.dimension_semantics<parallel>, #tpu.dimension_semantics<parallel>, #tpu.dimension_semantics<arbitrary>], iteration_bounds = array<i64: 1, 1, 1>, scalar_prefetch = 0 : i64, scratch_operands = 0 : i64, tpu.core_type = #tpu.core_type<tc>, window_params = [{transform_indices = @transform_0, window_bounds = array<i64: 16, 128>}, {transform_indices = @transform_1, window_bounds = array<i64: 128, 32>}, {transform_indices = @transform_2, window_bounds = array<i64: 1, 32>}, {transform_indices = @transform_3, window_bounds = array<i64: 16, 32>}, {transform_indices = @transform_4, window_bounds = array<i64: 16, 32>}]} {
    %c0 = arith.constant 0 : index
    %c0_0 = arith.constant 0 : index
    %0 = vector.load %arg3[%c0, %c0_0] : memref<16x128xbf16, #tpu.memory_space<vmem>>, vector<16x128xbf16>
    %c0_1 = arith.constant 0 : index
    %c0_2 = arith.constant 0 : index
    %1 = vector.load %arg4[%c0_1, %c0_2] : memref<128x32xbf16, #tpu.memory_space<vmem>>, vector<128x32xbf16>
    %cst = arith.constant dense<0.000000e+00> : vector<16x32xf32>
    %2 = tpu.matmul %0, %1, %cst {dimension_numbers = #tpu.dot_dimension_numbers<[1], [0], [0], [1], [0, 0, 1, 1], [], []>} : vector<16x128xbf16>, vector<128x32xbf16>, vector<16x32xf32> -> vector<16x32xf32>
    %c0_3 = arith.constant 0 : index
    %c0_4 = arith.constant 0 : index
    %3 = vector.load %arg5[%c0_3, %c0_4] : memref<1x32xf32, #tpu.memory_space<vmem>>, vector<1x32xf32>
    %4 = vector.broadcast %3 : vector<1x32xf32> to vector<16x32xf32>
    %5 = arith.addf %2, %4 : vector<16x32xf32>
    %c0_5 = arith.constant 0 : index
    %c0_6 = arith.constant 0 : index
    %6 = vector.load %arg6[%c0_5, %c0_6] : memref<16x32xbf16, #tpu.memory_space<vmem>>, vector<16x32xbf16>
    %7 = arith.extf %6 : vector<16x32xbf16> to vector<16x32xf32>
    %8 = arith.addf %5, %7 : vector<16x32xf32>
    %9 = arith.truncf %8 : vector<16x32xf32> to vector<16x32xbf16>
    %c0_7 = arith.constant 0 : index
    %c0_8 = arith.constant 0 : index
    %10 = vector.load %arg7[%c0_7, %c0_8] : memref<16x32xbf16, #tpu.memory_space<vmem>>, vector<16x32xbf16>
    tpu.vector_store %arg7[%c0_7, %c0_8], %9 {strides = array<i32>} : memref<16x32xbf16, #tpu.memory_space<vmem>>, vector<16x32xbf16>,
    return
  }
  func.func @transform_0(%arg0: i32, %arg1: i32, %arg2: i32) -> (i32, i32) {
    %c0_i32 = arith.constant 0 : i32
    return %arg0, %arg2 : i32, i32
  }
  func.func @transform_1(%arg0: i32, %arg1: i32, %arg2: i32) -> (i32, i32) {
    %c0_i32 = arith.constant 0 : i32
    return %arg2, %arg1 : i32, i32
  }
  func.func @transform_2(%arg0: i32, %arg1: i32, %arg2: i32) -> (i32, i32) {
    %c0_i32 = arith.constant 0 : i32
    %c0_i32_0 = arith.constant 0 : i32
    return %c0_i32, %arg1 : i32, i32
  }
  func.func @transform_3(%arg0: i32, %arg1: i32, %arg2: i32) -> (i32, i32) {
    %c0_i32 = arith.constant 0 : i32
    return %arg0, %arg1 : i32, i32
  }
  func.func @transform_4(%arg0: i32, %arg1: i32, %arg2: i32) -> (i32, i32) {
    %c0_i32 = arith.constant 0 : i32
    return %arg0, %arg1 : i32, i32
  }
}

module attributes {stable_mosaic.version = 11 : i64} {
  func.func @kernel(%arg0: i32, %arg1: i32, %arg2: i32, %arg3: memref<16x32xbf16, #tpu.memory_space<vmem>>, %arg4: memref<64x32xbf16, #tpu.memory_space<vmem>>, %arg5: memref<16x64xf32, #tpu.memory_space<vmem>>) attributes {dimension_semantics = [#tpu.dimension_semantics<parallel>, #tpu.dimension_semantics<parallel>, #tpu.dimension_semantics<arbitrary>], iteration_bounds = array<i64: 1, 1, 1>, scalar_prefetch = 0 : i64, scratch_operands = 0 : i64, tpu.core_type = #tpu.core_type<tc>, window_params = [{transform_indices = @transform_0, window_bounds = array<i64: 16, 32>}, {transform_indices = @transform_1, window_bounds = array<i64: 64, 32>}, {transform_indices = @transform_2, window_bounds = array<i64: 16, 64>}]} {
    %c0 = arith.constant 0 : index
    %c0_0 = arith.constant 0 : index
    %0 = vector.load %arg3[%c0, %c0_0] : memref<16x32xbf16, #tpu.memory_space<vmem>>, vector<16x32xbf16>
    %c0_1 = arith.constant 0 : index
    %c0_2 = arith.constant 0 : index
    %1 = vector.load %arg4[%c0_1, %c0_2] : memref<64x32xbf16, #tpu.memory_space<vmem>>, vector<64x32xbf16>
    %cst = arith.constant dense<0.000000e+00> : vector<16x64xf32>
    %2 = tpu.matmul %0, %1, %cst {dimension_numbers = #tpu.dot_dimension_numbers<[1], [1], [0], [0], [0, 0, 1, 0], [], []>} : vector<16x32xbf16>, vector<64x32xbf16>, vector<16x64xf32> -> vector<16x64xf32>
    %c0_3 = arith.constant 0 : index
    %c0_4 = arith.constant 0 : index
    %3 = vector.load %arg5[%c0_3, %c0_4] : memref<16x64xf32, #tpu.memory_space<vmem>>, vector<16x64xf32>
    tpu.vector_store %arg5[%c0_3, %c0_4], %2 {strides = array<i32>} : memref<16x64xf32, #tpu.memory_space<vmem>>, vector<16x64xf32>,
    return
  }
  func.func @transform_0(%arg0: i32, %arg1: i32, %arg2: i32) -> (i32, i32) {
    %c0_i32 = arith.constant 0 : i32
    return %arg0, %arg2 : i32, i32
  }
  func.func @transform_1(%arg0: i32, %arg1: i32, %arg2: i32) -> (i32, i32) {
    %c0_i32 = arith.constant 0 : i32
    return %arg1, %arg2 : i32, i32
  }
  func.func @transform_2(%arg0: i32, %arg1: i32, %arg2: i32) -> (i32, i32) {
    %c0_i32 = arith.constant 0 : i32
    return %arg0, %arg1 : i32, i32
  }
}

</mosaic_0001>

<bundles_post_ra>
// kernel: gpt_forward.16
= control target key start
LH: loop header
LB: loop body
LE: loop exit
PB: predicated region body
PF: predicated region fallthrough
CT: control target
= control target key end

     0   :  { %8 = vsyncpa [#allocation3], 0  ;;  %s336_s0 = inlined_call_operand.hbm [shape: bf16[16,32], index: 0, kind: input, shape index: {}]   ;;  %s337_s1 = inlined_call_operand.hbm [shape: f32[1,32], index: 1, kind: input, shape index: {}]   ;;  %s338_s2 = inlined_call_operand.hbm [shape: f32[1,32], index: 2, kind: input, shape index: {}]   ;;  %s339_s3 = inlined_call_operand.hbm [shape: bf16[16,32], index: 3, kind: output, shape index: {}]  }
   0x1   :  { %9 = vsyncpa [#allocation6], 0 }
   0x2   :  { %10 = vsyncpa [#allocation4], 0  ;;  %s245_s12 = smov [#allocation5]   ;;  %s246_s14 = smov [#allocation2]  }
   0x3   :  { %s29_s13 = sshll.u32 %s245_s12, 4  ;;  %s16_s15 = sshll.u32 %s246_s14, 4  ;;  %s30_s13 = int_to_ptr.vmem [resolvable:$true] %s29_s13  ;;  %s271_s15 = int_to_ptr.vmem [resolvable:$true] %s16_s15 }
   0x4   :  { %s151_s18 = scalar_lea.hbm %s337_s1, 16 }
   0x5   :  { %p152_p0 = scmp.ne.s32.totalorder %s337_s1, %s151_s18  ;;  %p155_p1 = scmp.lt.u32.totalorder %s151_s18, %s337_s1 }
   0x7   :  { %p157_p2 = pnand %p155_p1, %p152_p0 }
   0x9   :  { %160 = shalt.err (!%p157_p2)
}
   0xa   :  { %s161_s23 = scalar_lea.vmem %s30_s13, 16  ;;  %s165_s24 = scalar_lea.vmem %s30_s13, 32 }
   0xb   :  { %p162_p3 = scmp.ne.s32.totalorder %s30_s13, %s161_s23  ;;  %p166_p4 = scmp.lt.s32.totalorder %s30_s13, %s30_s13 }
   0xc   :  { %p167_p5 = scmp.lt.s32.totalorder %s165_s24, %s161_s23 }
   0xe   :  { %p168_p6 = por %p167_p5, %p166_p4 }
  0x10   :  { %p169_p7 = pnand %p168_p6, %p162_p3 }
  0x12   :  { %172 = shalt.err (!%p169_p7)
}
  0x13   :  { %32 = dma.hbm_to_vmem [thread:$0]  %s337_s1, 16, %s30_s13, [#allocation6]  }
  0x14   :  { %s173_s29 = scalar_lea.hbm %s336_s0, 128 }
  0x15   :  { %p174_p8 = scmp.ne.s32.totalorder %s336_s0, %s173_s29  ;;  %p177_p9 = scmp.lt.u32.totalorder %s173_s29, %s336_s0 }
  0x17   :  { %p179_p10 = pnand %p177_p9, %p174_p8 }
  0x19   :  { %182 = shalt.err (!%p179_p10)
}
  0x1a   :  { %s183_s7 = scalar_lea.vmem %s271_s15, 128  ;;  %p188_p12 = scmp.lt.s32.totalorder %s271_s15, %s271_s15 }
  0x1b   :  { %p184_p11 = scmp.ne.s32.totalorder %s271_s15, %s183_s7  ;;  %p189_p13 = scmp.lt.s32.totalorder %s183_s7, %s183_s7 }
  0x1d   :  { %p190_p0 = por %p189_p13, %p188_p12 }
  0x1f   :  { %p191_p1 = pnand %p190_p0, %p184_p11 }
  0x21   :  { %194 = shalt.err (!%p191_p1)
}
  0x22   :  { %s247_s1 = smov 64   ;;  %s248_s8 = smov 4  }
  0x23   :  { %22 = dma.hbm_to_vmem [thread:$0]  %s336_s0, 128, %s271_s15, [#allocation3], %s247_s1, %s247_s1, %s248_s8  }
  0x24   :  { %s249_s11 = smov [#allocation7]   ;;  %s195_s16 = scalar_lea.hbm %s338_s2, 16 }
  0x25   :  { %s39_s12 = sshll.u32 %s249_s11, 4  ;;  %p196_p2 = scmp.ne.s32.totalorder %s338_s2, %s195_s16  ;;  %s40_s12 = int_to_ptr.vmem [resolvable:$true] %s39_s12 }
  0x26   :  { %p199_p3 = scmp.lt.u32.totalorder %s195_s16, %s338_s2 }
  0x28   :  { %p201_p4 = pnand %p199_p3, %p196_p2 }
  0x2a   :  { %204 = shalt.err (!%p201_p4)
}
  0x2b   :  { %s205_s21 = scalar_lea.vmem %s40_s12, 16  ;;  %s209_s0 = scalar_lea.vmem %s40_s12, 32 }
  0x2c   :  { %p206_p5 = scmp.ne.s32.totalorder %s40_s12, %s205_s21  ;;  %p210_p6 = scmp.lt.s32.totalorder %s40_s12, %s40_s12 }
  0x2d   :  { %p211_p7 = scmp.lt.s32.totalorder %s209_s0, %s205_s21 }
  0x2f   :  { %p212_p8 = por %p211_p7, %p210_p6 }
  0x31   :  { %p213_p9 = pnand %p212_p8, %p206_p5 }
  0x33   :  { %216 = shalt.err (!%p213_p9)
}
  0x34   :  { %42 = dma.hbm_to_vmem [thread:$0]  %s338_s2, 16, %s40_s12, [#allocation6]  }
  0x35   :  { %239 = dma.done.wait [#allocation3], 128  }
  0x36   :  { %240 = vsyncadd [#allocation3], 4294967168 }
  0x37   :  { %241 = dma.done.wait [#allocation6], 32  }
  0x38   :  { %242 = vsyncadd [#allocation6], 4294967264  ;;  %v138_v0 = vld [vmem:[#allocation2] sm:$0xff]   ;;  %vm56_vm0 = vcmask 261120   ;;  %v131_v22 = vld [vmem:[#allocation5] ss:$0 sm:$0xff] }
  0x39   :  { %v139_v1 = vunpack.c.l.bf16 %v138_v0  ;;  %v140_v2 = vunpack.c.h.bf16 %v138_v0  ;;  %v132_v24 = vld [vmem:[#allocation7] ss:$0 sm:$0xff]  ;;  %vm110_vm1 = vcmask 257024   ;;  %s250_s2 = smov [#allocation8]  }
  0x3a   :  { %s118_s23 = sshll.u32 %s250_s2, 4  ;;  %s119_s23 = int_to_ptr.vmem [resolvable:$true] %s118_s23 }
  0x3b   :  { %v57_v3 = vsel %vm56_vm0, %v139_v1, 0.0  ;;  %v60_v4 = vsel %vm56_vm0, %v140_v2, 0.0  ;;  %s217_s24 = scalar_lea.vmem %s119_s23, 128  ;;  %p222_p11 = scmp.lt.s32.totalorder %s119_s23, %s119_s23 }
  0x3c   :  { %58 = vadd.xlane.f32.xlu0 %v57_v3  ;;  %p218_p10 = scmp.ne.s32.totalorder %s119_s23, %s217_s24  ;;  %p223_p12 = scmp.lt.s32.totalorder %s217_s24, %s217_s24 }
  0x3e   :  { %p224_p13 = por %p223_p12, %p222_p11 }
  0x40   :  { %61 = vadd.xlane.f32.xlu0 %v60_v4  ;;  %p225_p0 = pnand %p224_p13, %p218_p10 }
  0xc9   :  { %v59_v5 = vpop.xlane.xlu0 %58 }
  0xca   :  { %v64_v6 = vmul.f32 0.03125, %v59_v5 }
  0xcc   :  { %v66_v7 = vsub.f32 %v139_v1, %v64_v6 }
  0xcd   :  { %v62_v8 = vpop.xlane.xlu0 %61 }
  0xce   :  { %v65_v9 = vmul.f32 0.03125, %v62_v8  ;;  %v68_v10 = vmul.f32 %v66_v7, %v66_v7 }
  0xd0   :  { %v67_v11 = vsub.f32 %v140_v2, %v65_v9  ;;  %v70_v12 = vsel %vm56_vm0, %v68_v10, 0.0 }
  0xd1   :  { %71 = vadd.xlane.f32.xlu1 %v70_v12 }
  0xd2   :  { %v69_v13 = vmul.f32 %v67_v11, %v67_v11 }
  0xd4   :  { %v73_v14 = vsel %vm56_vm0, %v69_v13, 0.0 }
  0xd5   :  { %74 = vadd.xlane.f32.xlu1 %v73_v14 }
 0x15e   :  { %v72_v15 = vpop.xlane.xlu1 %71 }
 0x15f   :  { %v76_v16 = vmul.f32 0.03125, %v72_v15 }
 0x161   :  { %v78_v17 = vadd.f32 1e-05, %v76_v16 }
 0x162   :  { %v75_v18 = vpop.xlane.xlu1 %74 }
 0x163   :  { %147 = vrsqrt.f32 %v78_v17  ;;  %v77_v19 = vmul.f32 0.03125, %v75_v18 }
 0x165   :  { %v79_v20 = vadd.f32 1e-05, %v77_v19 }
 0x167   :  { %149 = vrsqrt.f32 %v79_v20 }
 0x16d   :  { %v148_v21 = vpop.eup %147 }
 0x16e   :  { %v82_v23 = vmul.f32 %v148_v21, %v66_v7 }
 0x170   :  { %v91_v25 = vmul.f32 %v131_v22, %v82_v23 }
 0x171   :  { %v150_v26 = vpop.eup %149 }
 0x172   :  { %v83_v27 = vmul.f32 %v150_v26, %v67_v11  ;;  %v100_v28 = vadd.f32 %v132_v24, %v91_v25 }
 0x174   :  { %v92_v29 = vmul.f32 %v131_v22, %v83_v27  ;;  %v135_v30 = vpack.c.bf16 %v100_v28, %v100_v28 }
 0x176   :  { %v101_v31 = vadd.f32 %v132_v24, %v92_v29  ;;  %111 = vst.msk [vmem:[#allocation8] sm:$0xf] %vm110_vm1, %v135_v30 }
 0x178   :  { %v136_v32 = vpack.c.bf16 %v101_v31, %v101_v31 }
 0x17a   :  { %112 = vst.msk [vmem:[#allocation8 + $0x4] sm:$0xf] %vm110_vm1, %v136_v32 }
 0x17b   :  { %228 = shalt.err (!%p225_p0)
}
 0x17c   :  { %s229_s27 = scalar_lea.hbm %s339_s3, 128 }
 0x17d   :  { %p230_p1 = scmp.ne.s32.totalorder %s339_s3, %s229_s27  ;;  %p233_p2 = scmp.lt.u32.totalorder %s229_s27, %s339_s3 }
 0x17f   :  { %p235_p3 = pnand %p233_p2, %p230_p1 }
 0x181   :  { %238 = shalt.err (!%p235_p3)
}
 0x182   :  { %124 = dma.vmem_to_hbm [thread:$0]  %s119_s23, 128, %s339_s3, [#allocation4], %s247_s1, %s247_s1, %s248_s8  }
 0x183   :  { %243 = dma.done.wait [#allocation4], 128  }
 0x184   :  { %244 = vsyncadd [#allocation4], 4294967168 }
 0x185   :  { %128 = vsyncpa [#allocation3], 1 }
 0x186   :  { %129 = vsyncpa [#allocation6], 1 }
 0x187   :  { %130 = vsyncpa [#allocation4], 1 }

// kernel: gpt_forward.17
= control target key start
LH: loop header
LB: loop body
LE: loop exit
PB: predicated region body
PF: predicated region fallthrough
CT: control target
= control target key end

     0   :  { %8 = vsyncpa [#allocation3], 0  ;;  %s376_s0 = inlined_call_operand.hbm [shape: bf16[16,32], index: 0, kind: input, shape index: {}]   ;;  %s377_s1 = inlined_call_operand.hbm [shape: bf16[32,96], index: 1, kind: input, shape index: {}]   ;;  %s378_s2 = inlined_call_operand.hbm [shape: f32[1,96], index: 2, kind: input, shape index: {}]   ;;  %s379_s3 = inlined_call_operand.hbm [shape: bf16[16,96], index: 3, kind: output, shape index: {}]  }
   0x1   :  { %9 = vsyncpa [#allocation6], 0 }
   0x2   :  { %10 = vsyncpa [#allocation4], 0  ;;  %s284_s12 = smov [#allocation5]   ;;  %s285_s14 = smov [#allocation2]  }
   0x3   :  { %s28_s13 = sshll.u32 %s284_s12, 4  ;;  %s16_s15 = sshll.u32 %s285_s14, 4  ;;  %s29_s13 = int_to_ptr.vmem [resolvable:$true] %s28_s13  ;;  %s312_s15 = int_to_ptr.vmem [resolvable:$true] %s16_s15 }
   0x4   :  { %s190_s18 = scalar_lea.hbm %s377_s1, 256 }
   0x5   :  { %p191_p0 = scmp.ne.s32.totalorder %s377_s1, %s190_s18  ;;  %p194_p1 = scmp.lt.u32.totalorder %s190_s18, %s377_s1 }
   0x7   :  { %p196_p2 = pnand %p194_p1, %p191_p0 }
   0x9   :  { %199 = shalt.err (!%p196_p2)
}
   0xa   :  { %s200_s23 = scalar_lea.vmem %s29_s13, 256  ;;  %p205_p4 = scmp.lt.s32.totalorder %s29_s13, %s29_s13 }
   0xb   :  { %p201_p3 = scmp.ne.s32.totalorder %s29_s13, %s200_s23  ;;  %p206_p5 = scmp.lt.s32.totalorder %s200_s23, %s200_s23 }
   0xd   :  { %p207_p6 = por %p206_p5, %p205_p4 }
   0xf   :  { %p208_p7 = pnand %p207_p6, %p201_p3 }
  0x11   :  { %211 = shalt.err (!%p208_p7)
}
  0x12   :  { %s286_s24 = smov 64   ;;  %s287_s25 = smov 4  }
  0x13   :  { %34 = dma.hbm_to_vmem [thread:$0]  %s377_s1, 256, %s29_s13, [#allocation6], %s286_s24, %s286_s24, %s287_s25  }
  0x14   :  { %s212_s30 = scalar_lea.hbm %s376_s0, 128 }
  0x15   :  { %p213_p8 = scmp.ne.s32.totalorder %s376_s0, %s212_s30  ;;  %p216_p9 = scmp.lt.u32.totalorder %s212_s30, %s376_s0 }
  0x17   :  { %p218_p10 = pnand %p216_p9, %p213_p8 }
  0x19   :  { %221 = shalt.err (!%p218_p10)
}
  0x1a   :  { %s222_s8 = scalar_lea.vmem %s312_s15, 128  ;;  %p227_p12 = scmp.lt.s32.totalorder %s312_s15, %s312_s15 }
  0x1b   :  { %p223_p11 = scmp.ne.s32.totalorder %s312_s15, %s222_s8  ;;  %p228_p13 = scmp.lt.s32.totalorder %s222_s8, %s222_s8 }
  0x1d   :  { %p229_p0 = por %p228_p13, %p227_p12 }
  0x1f   :  { %p230_p1 = pnand %p229_p0, %p223_p11 }
  0x21   :  { %233 = shalt.err (!%p230_p1)
}
  0x22   :  { %22 = dma.hbm_to_vmem [thread:$0]  %s376_s0, 128, %s312_s15, [#allocation3], %s286_s24, %s286_s24, %s287_s25  }
  0x23   :  { %s288_s10 = smov [#allocation7]   ;;  %s234_s14 = scalar_lea.hbm %s378_s2, 16 }
  0x24   :  { %s41_s11 = sshll.u32 %s288_s10, 4  ;;  %p235_p2 = scmp.ne.s32.totalorder %s378_s2, %s234_s14  ;;  %s42_s11 = int_to_ptr.vmem [resolvable:$true] %s41_s11 }
  0x25   :  { %p238_p3 = scmp.lt.u32.totalorder %s234_s14, %s378_s2 }
  0x27   :  { %p240_p4 = pnand %p238_p3, %p235_p2 }
  0x29   :  { %243 = shalt.err (!%p240_p4)
}
  0x2a   :  { %s244_s20 = scalar_lea.vmem %s42_s11, 16  ;;  %s248_s0 = scalar_lea.vmem %s42_s11, 32 }
  0x2b   :  { %p245_p5 = scmp.ne.s32.totalorder %s42_s11, %s244_s20  ;;  %p249_p6 = scmp.lt.s32.totalorder %s42_s11, %s42_s11 }
  0x2c   :  { %p250_p7 = scmp.lt.s32.totalorder %s248_s0, %s244_s20 }
  0x2e   :  { %p251_p8 = por %p250_p7, %p249_p6 }
  0x30   :  { %p252_p9 = pnand %p251_p8, %p245_p5 }
  0x32   :  { %255 = shalt.err (!%p252_p9)
}
  0x33   :  { %44 = dma.hbm_to_vmem [thread:$0]  %s378_s2, 16, %s42_s11, [#allocation6]  }
  0x34   :  { %278 = dma.done.wait [#allocation3], 128  }
  0x35   :  { %279 = vsyncadd [#allocation3], 4294967168 }
  0x36   :  { %280 = dma.done.wait [#allocation6], 272  }
  0x37   :  { %281 = vsyncadd [#allocation6], 4294967024  ;;  %v289_v0 = vmov 0.0   ;;  %vm290_vm0 = vmmov 0   ;;  %v187_v1 = vld [vmem:[#allocation5] sm:$0xff]   ;;  %v188_v2 = vld [vmem:[#allocation5 + $0x8] sm:$0xff]  }
  0x38   :  { %171 = vmatprep.subr.bf16.mxu0 %v289_v0  ;;  %175 = vmatprep.mubr.msk.bf16.mxu0 %vm290_vm0, %v289_v0  ;;  %v189_v3 = vld [vmem:[#allocation2] sm:$0xff]   ;;  %vm85_vm1 = vcmask 261120   ;;  %v159_v4 = vld [vmem:[#allocation7] ss:$0 sm:$0xff]  ;;  %vm138_vm2 = vcmask 781312   ;;  %s291_s2 = smov [#allocation8]  }
  0x39   :  { %172 = vmatpush3.bf16.msra.mxu0 %v187_v1  ;;  %s146_s22 = sshll.u32 %s291_s2, 4  ;;  %s147_s22 = int_to_ptr.vmem [resolvable:$true] %s146_s22 }
  0x3a   :  { %173 = vmatprep.subr.bf16.mxu0 %v289_v0  ;;  %s256_s23 = scalar_lea.vmem %s147_s22, 128  ;;  %p261_p11 = scmp.lt.s32.totalorder %s147_s22, %s147_s22 }
  0x3b   :  { %p257_p10 = scmp.ne.s32.totalorder %s147_s22, %s256_s23  ;;  %p262_p12 = scmp.lt.s32.totalorder %s256_s23, %s256_s23 }
  0x3d   :  { %174 = vmatpush3.bf16.msra.mxu0 %v188_v2  ;;  %p263_p13 = por %p262_p12, %p261_p11 }
  0x3f   :  { %p264_p0 = pnand %p263_p13, %p257_p10 }
  0x40   :  { %176 = vmatmul.mubr.msk.bf16.vlgmr.msra.gmra.mrb[0].mxu0 %vm85_vm1, %v189_v3 }
 0x113   :  { %v123_v5 = vpop.f32.mrb[0].mxu0 }
 0x114   :  { %v124_v6 = vadd.f32 %v159_v4, %v123_v5  ;;  %v177_v7 = vpop.f32.mrb[1].mxu0 }
 0x115   :  { %v126_v8 = vpop.f32.mrb[2].mxu0 }
 0x116   :  { %v166_v9 = vpack.c.bf16 %v124_v6, %v124_v6  ;;  %v127_v10 = vadd.f32 %v159_v4, %v126_v8  ;;  %v178_v11 = vpop.f32.mrb[3].mxu0 }
 0x118   :  { %v167_v12 = vpack.c.bf16 %v127_v10, %v127_v10  ;;  %139 = vst.msk [vmem:[#allocation8] sm:$0xf] %vm138_vm2, %v166_v9 }
 0x11a   :  { %140 = vst.msk [vmem:[#allocation8 + $0x4] sm:$0xf] %vm138_vm2, %v167_v12 }
 0x11b   :  { %267 = shalt.err (!%p264_p0)
}
 0x11c   :  { %s268_s28 = scalar_lea.hbm %s379_s3, 128 }
 0x11d   :  { %p269_p1 = scmp.ne.s32.totalorder %s379_s3, %s268_s28  ;;  %p272_p2 = scmp.lt.u32.totalorder %s268_s28, %s379_s3 }
 0x11f   :  { %p274_p3 = pnand %p272_p2, %p269_p1 }
 0x121   :  { %277 = shalt.err (!%p274_p3)
}
 0x122   :  { %152 = dma.vmem_to_hbm [thread:$0]  %s147_s22, 128, %s379_s3, [#allocation4], %s286_s24, %s286_s24, %s287_s25  }
 0x123   :  { %282 = dma.done.wait [#allocation4], 128  }
 0x124   :  { %283 = vsyncadd [#allocation4], 4294967168 }
 0x125   :  { %156 = vsyncpa [#allocation3], 1 }
 0x126   :  { %157 = vsyncpa [#allocation6], 1 }
 0x127   :  { %158 = vsyncpa [#allocation4], 1 }

// kernel: gpt_forward.18
= control target key start
LH: loop header
LB: loop body
LE: loop exit
PB: predicated region body
PF: predicated region fallthrough
CT: control target
= control target key end

     0   :  { %s1362_s0 = inlined_call_operand.hbm [shape: bf16[8,8,8], index: 0, kind: input, shape index: {}]   ;;  %s1363_s1 = inlined_call_operand.hbm [shape: bf16[8,8,8], index: 1, kind: input, shape index: {}]   ;;  %s1364_s2 = inlined_call_operand.hbm [shape: bf16[8,8,8], index: 2, kind: input, shape index: {}]   ;;  %s1365_s3 = inlined_call_operand.hbm [shape: bf16[8,8,8], index: 3, kind: output, shape index: {}]  }
   0x1   :  { %1371 = sst [smem:[#allocation19_spill]] %s1363_s1 }
   0x2   :  { %8 = vsyncpa [#allocation7], 0 }
   0x3   :  { %10 = vsyncpa [#allocation7 + $0x1], 0 }
   0x4   :  { %11 = vsyncpa [#allocation10], 0 }
   0x5   :  { %13 = vsyncpa [#allocation10 + $0x1], 0 }
   0x6   :  { %14 = vsyncpa [#allocation8], 0 }
   0x7   :  { %16 = vsyncpa [#allocation8 + $0x1], 0  ;;  %s1087_s12 = smov 0   ;;  %s1089_s13 = smov 0  }
   0x8   :  { %s1091_s14 = smov 0   ;;  %s1093_s15 = smov 0  }
   0x9   :  { %s1095_s16 = smov 0   ;;  %s1097_s17 = smov 0  }
   0xa LB: > { %1372 = sst [smem:[#allocation16_spill]] %s1053_s16  ;;  %s1118_s18 = sadd.s32 4294967295, %s1057_s17   ;;  %s1057_s17 = sphi %s1097_s17, %s22_s17   ;;  %s1053_s16 = sphi %s1095_s16, %s1392_s16   ;;  %s1049_s15 = sphi %s1093_s15, %s1391_s15   ;;  %s1045_s14 = sphi %s1091_s14, %s1395_s14   ;;  %s1041_s13 = sphi %s1089_s13, %s1394_s13   ;;  %s1037_s12 = sphi %s1087_s12, %s1393_s12  }
   0xb   : > { %s759_s19 = sadd.s32 4294967294, %s1057_s17   ;;  %s41_s20 = sadd.s32 1, %s1053_s16 }
   0xc   : > { %s50_s21 = sadd.s32 1, %s1045_s14  ;;  %p43_p0 = scmp.ge.s32.totalorder %s41_s20, 8 }
   0xd   : > { %p57_p1 = scmp.ne.s32.totalorder %s1045_s14, %s1041_s13  ;;  %p58_p2 = scmp.eq.s32.totalorder %s1057_s17, 0 }
   0xe   : > { %p63_p3 = scmp.ne.s32.totalorder %s1041_s13, %s1037_s12  ;;  %s1397_s20 = smov (%p43_p0, %s41_s20), 0 }
   0xf   : > { %1373 = sst [smem:[#allocation17_spill]] %s1397_s20  ;;  %p1130_p4 = por %p58_p2, %p57_p1 }
  0x10   : > { %p64_p5 = scmp.eq.s32.totalorder %s1118_s18, 0  ;;  %s45_s23 = ssub.s32 %s1053_s16, %s1397_s20 }
  0x11   : > { %p153_p6 = scmp.eq.s32.totalorder %s1118_s18, 7  ;;  %p48_p7 = scmp.eq.s32.totalorder %s45_s23, 0 }
  0x12   : > { %p1138_p8 = por %p64_p5, %p63_p3  ;;  %p159_p10 = scmp.eq.s32.totalorder %s759_s19, 7 }
  0x13   : > { %p1142_p9 = por %p153_p6, %p57_p1  ;;  %p819_p12 = scmp.lt.s32.totalorder %s1057_s17, 8 }
  0x14   : > { %s1375_s24 = scalar_select %p1138_p8, 1, 0 }
  0x15   : > { %s1376_s25 = scalar_select %p1142_p9, 1, 0 }
  0x16   : > { %s1147_s26 = scalar_select %p48_p7, %s1045_s14, %s50_s21  }
  0x17   : > { %p1149_p11 = por %p159_p10, %p63_p3  ;;  %s179_s28 = sand.u32 1, %s1045_s14  }
  0x18   : > { %1377 = sst [smem:[#allocation18_spill]] %s1147_s26  ;;  %s1157_s29 = sshll.u32 %s179_s28, 2 }
  0x19   : > { %s1378_s27 = scalar_select %p1149_p11, 1, 0 }
  0x1a   : > { %s1160_s30 = sshll.u32 %s1053_s16, 6  ;;  %p1164_p13 = pnand %p819_p12, %p1130_p4 }
  0x1b   : > { %s198_s5 = sand.u32 1, %s1057_s17   ;;  %s1380_s1 = sld [smem:[#allocation19_spill]] }
  0x1c   : > { %s1379_s4 = scalar_select %p1164_p13, 1, 0 }
  0x1d   : > { %s202_s9 = scalar_lea.vmem [#allocation9], %s1157_s29  ;;  %s1180_s11 = scalar_lea.sflag [#allocation10], %s198_s5 }
  0x1e   : > { %s212_s10 = sshll.u32 %s202_s9, 4  ;;  %p1186_p3 = pneg %p1164_p13  ;;  %s1177_s10 = int_to_ptr.vmem [resolvable:$true] %s212_s10 }
  0x21   : > { %s1173_s8 = scalar_lea.hbm %s1380_s1, %s1160_s30  ;;  %s886_s6 = scalar_lea.hbm %s1380_s1, 512 }
  0x22   : > { %s881_s19 = scalar_lea.hbm %s1173_s8, 64  ;;  %p887_p6 = scmp.lt.u32.totalorder %s1173_s8, %s1380_s1 }
  0x23   : > { %p882_p2 = scmp.ne.s32.totalorder %s1173_s8, %s881_s19  ;;  %p888_p7 = scmp.lt.u32.totalorder %s886_s6, %s881_s19 }
  0x24   : > { %p890_p12 = scmp.lt.u32.totalorder %s881_s19, %s1173_s8 }
  0x25   : > { %p884_p4 = pnand %p1186_p3, %p882_p2  ;;  %p889_p10 = por %p888_p7, %p887_p6 }
  0x27   : > { %p885_p5 = pneg %p884_p4  ;;  %p891_p0 = por %p890_p12, %p889_p10 }
  0x29   : > { %p892_p1 = pnand %p891_p0, %p885_p5 }
  0x2b   : > { %895 = shalt.err (!%p892_p1)
}
  0x2c   : > { %s896_s5 = scalar_lea.vmem %s1177_s10, 64  ;;  %s1059_s22 = smov [#allocation9]  }
  0x2d   : > { %p897_p2 = scmp.ne.s32.totalorder %s1177_s10, %s896_s5  ;;  %s901_s23 = sshll.u32 %s1059_s22, 4  ;;  %s902_s23 = int_to_ptr.vmem [resolvable:$false] %s901_s23 }
  0x2e   : > { %s903_s7 = scalar_lea.vmem %s902_s23, 128  ;;  %p904_p9 = scmp.lt.s32.totalorder %s1177_s10, %s902_s23 }
  0x2f   : > { %p899_p4 = pnand %p897_p2, %p1186_p3  ;;  %p905_p8 = scmp.lt.s32.totalorder %s903_s7, %s896_s5 }
  0x31   : > { %p900_p11 = pneg %p899_p4  ;;  %p906_p6 = por %p905_p8, %p904_p9 }
  0x33   : > { %p907_p7 = pnand %p906_p6, %p900_p11 }
  0x35   : > { %910 = shalt.err (!%p907_p7)
}
  0x36   : > { %811 = dma.hbm_to_vmem [thread:$0]  (!%p1164_p13), %s1173_s8, 64, %s1177_s10, %s1180_s11  }
  0x37   : > { %p1382_p0 = scmp.lt.s32.totalorder %s1057_s17, 9  ;;  %p1383_p1 = scmp.ge.s32.totalorder %s1057_s17, 1 }
  0x38   : > { %s1222_s5 = scalar_lea.hbm %s1362_s0, %s1160_s30  ;;  %s183_s22 = scalar_lea.vmem [#allocation6], %s1157_s29 }
  0x39   : > { %p1214_p5 = pnand %p1383_p1, %p1382_p0  ;;  %s191_s23 = sshll.u32 %s183_s22, 4  ;;  %s1225_s23 = int_to_ptr.vmem [resolvable:$true] %s191_s23 }
  0x3a   : > { %s1231_s7 = scalar_lea.hbm %s1364_s2, %s1160_s30  ;;  %s180_s1 = scalar_lea.sflag [#allocation7], %s179_s28 }
  0x3b   : > { %s1384_s19 = scalar_select %p1214_p5, 1, 0 }
  0x3c   : > { %s911_s20 = scalar_lea.hbm %s1222_s5, 64  ;;  %s916_s16 = scalar_lea.hbm %s1362_s0, 512 }
  0x3d   : > { %p912_p8 = scmp.ne.s32.totalorder %s1222_s5, %s911_s20  ;;  %p917_p10 = scmp.lt.u32.totalorder %s1222_s5, %s1362_s0 }
  0x3e   : > { %p918_p12 = scmp.lt.u32.totalorder %s916_s16, %s911_s20  ;;  %p920_p4 = scmp.lt.u32.totalorder %s911_s20, %s1222_s5 }
  0x3f   : > { %p914_p9 = pnand %p912_p8, %p1186_p3 }
  0x40   : > { %p919_p2 = por %p918_p12, %p917_p10 }
  0x41   : > { %p915_p11 = pneg %p914_p9 }
  0x42   : > { %p921_p6 = por %p920_p4, %p919_p2 }
  0x44   : > { %p922_p7 = pnand %p921_p6, %p915_p11 }
  0x46   : > { %925 = shalt.err (!%p922_p7)
}
  0x47   : > { %s926_s28 = scalar_lea.vmem %s1225_s23, 64  ;;  %s1060_s30 = smov [#allocation6]  }
  0x48   : > { %p927_p0 = scmp.ne.s32.totalorder %s1225_s23, %s926_s28  ;;  %s931_s8 = sshll.u32 %s1060_s30, 4  ;;  %s932_s8 = int_to_ptr.vmem [resolvable:$false] %s931_s8 }
  0x49   : > { %s933_s26 = scalar_lea.vmem %s932_s8, 128  ;;  %p934_p9 = scmp.lt.s32.totalorder %s1225_s23, %s932_s8 }
  0x4a   : > { %p929_p1 = pnand %p927_p0, %p1186_p3  ;;  %p935_p5 = scmp.lt.s32.totalorder %s933_s26, %s926_s28 }
  0x4c   : > { %p930_p8 = pneg %p929_p1  ;;  %p936_p10 = por %p935_p5, %p934_p9 }
  0x4e   : > { %p937_p12 = pnand %p936_p10, %p930_p8 }
  0x50   : > { %940 = shalt.err (!%p937_p12)
}
  0x51   : > { %808 = dma.hbm_to_vmem [thread:$0]  (!%p1164_p13), %s1222_s5, 64, %s1225_s23, %s180_s1  }
  0x52   : > { %s223_s16 = scalar_lea.vmem [#allocation11], %s1157_s29  ;;  %s941_s10 = scalar_lea.hbm %s1231_s7, 64 }
  0x53   : > { %s233_s20 = sshll.u32 %s223_s16, 4  ;;  %p942_p11 = scmp.ne.s32.totalorder %s1231_s7, %s941_s10  ;;  %s234_s20 = int_to_ptr.vmem [resolvable:$true] %s233_s20 }
  0x54   : > { %s946_s22 = scalar_lea.hbm %s1364_s2, 512  ;;  %p947_p4 = scmp.lt.u32.totalorder %s1231_s7, %s1364_s2 }
  0x55   : > { %p944_p5 = pnand %p942_p11, %p1186_p3  ;;  %p948_p6 = scmp.lt.u32.totalorder %s946_s22, %s941_s10 }
  0x56   : > { %p950_p0 = scmp.lt.u32.totalorder %s941_s10, %s1231_s7 }
  0x57   : > { %p945_p2 = pneg %p944_p5  ;;  %p949_p7 = por %p948_p6, %p947_p4 }
  0x59   : > { %p951_p1 = por %p950_p0, %p949_p7 }
  0x5b   : > { %p952_p8 = pnand %p951_p1, %p945_p2 }
  0x5d   : > { %955 = shalt.err (!%p952_p8)
}
  0x5e   : > { %s956_s1 = scalar_lea.vmem %s234_s20, 64  ;;  %s1061_s29 = smov [#allocation11]  }
  0x5f   : > { %p957_p9 = scmp.ne.s32.totalorder %s234_s20, %s956_s1  ;;  %s961_s5 = sshll.u32 %s1061_s29, 4  ;;  %s962_s5 = int_to_ptr.vmem [resolvable:$false] %s961_s5 }
  0x60   : > { %s963_s23 = scalar_lea.vmem %s962_s5, 128  ;;  %p964_p11 = scmp.lt.s32.totalorder %s234_s20, %s962_s5 }
  0x61   : > { %p959_p10 = pnand %p957_p9, %p1186_p3  ;;  %p965_p5 = scmp.lt.s32.totalorder %s963_s23, %s956_s1 }
  0x63   : > { %p960_p12 = pneg %p959_p10  ;;  %p966_p13 = por %p965_p5, %p964_p11 }
  0x65   : > { %p967_p4 = pnand %p966_p13, %p960_p12 }
  0x67   : > { %970 = shalt.err (!%p967_p4)
}
  0x68   : > { %p1385_p6 = scmp.ne.s32.totalorder %s1379_s4, 0  ;;  %p1386_p2 = scmp.ne.s32.totalorder %s1384_s19, 0 }
  0x69   : > { %s1278_s21 = sand.u32 (!%p1386_p2), 1, %s1041_s13   ;;  %p1387_p13 = scmp.ne.s32.totalorder (!%p1386_p2), %s1375_s24, 0 }
  0x6a   : > { %814 = dma.hbm_to_vmem [thread:$0]  (!%p1385_p6), %s1231_s7, 64, %s234_s20, %s1180_s11  }
  0x6b   : > { %242 = sbr.rel (%p1386_p2) target bundleno = 945 (0x3b1), region = 32  ;;  %s1281_s8 = sshll.u32 (!%p1386_p2), %s1278_s21, 2 }
  0x6c   : > { %s245_s26 = scalar_lea.sflag (!%p1386_p2), [#allocation7], %s1278_s21  ;;  %s248_s16 = scalar_lea.vmem (!%p1386_p2), [#allocation6], %s1281_s8 }
  0x72   : > { %1024 = dma.done.wait (%p1387_p13), %s245_s26, 64  }
  0x73   : > { %1026 = vsyncadd (%p1387_p13), %s245_s26, 4294967232  ;;  %s253_s4 = sand.u32 1, %s1118_s18   ;;  %s257_s19 = scalar_lea.vmem [#allocation9], %s1281_s8 }
  0x74   : > { %s254_s11 = scalar_lea.sflag [#allocation10], %s253_s4 }
  0x75   : > { %1028 = dma.done.wait (%p1387_p13), %s254_s11, 128  }
  0x76   : > { %1030 = vsyncadd (%p1387_p13), %s254_s11, 4294967168  ;;  %vm311_vm0 = vcmask 64512   ;;  %v1062_v0 = vmov 0.0   ;;  %vm1063_vm1 = vmmov 0   ;;  %v459_v1 = vld [vmem:[%s257_s19] sm:$0xf]  ;;  %v510_v9 = vlaneseq }
  0x77   : > { %785 = vmatprep.subr.bf16.mxu0 %v1062_v0  ;;  %312 = vst.msk [vmem:[#allocation4] sm:$0xff] %vm311_vm0, %v1062_v0  ;;  %787 = vmatprep.mubr.msk.bf16.mxu0 %vm1063_vm1, %v1062_v0  ;;  %v313_v2 = vld [vmem:[%s248_s16] sm:$0xf]  ;;  %v467_v3 = vsel %vm311_vm0, %v459_v1, 0  ;;  %vm317_vm2 = vcmask 60416   ;;  %vm308_vm3 = vcmask 7168  }
  0x78   : > { %791 = vmatprep.subr.bf16.mxu1 %v1062_v0  ;;  %793 = vmatprep.mubr.msk.bf16.mxu1 %vm1063_vm1, %v1062_v0  ;;  %v314_v4 = vunpack.c.l.bf16 %v313_v2  ;;  %v1064_v8 = vmov -1e+30   ;;  %310 = vst.msk [vmem:[#allocation3] sm:$0xff] %vm308_vm3, %v1062_v0  ;;  %v511_v10 = vshrl.u32 %v510_v9, 7  ;;  %v516_v11 = vand.u32 127, %v510_v9  ;;  %s266_s18 = scalar_lea.vmem [#allocation11], %s1281_s8 }
  0x79   : > { %786 = vmatpush3.bf16.xpose.msra.mxu0 %v467_v3  ;;  %309 = vst.msk [vmem:[#allocation2] sm:$0xff] %vm308_vm3, %v1064_v8  ;;  %v1065_v18 = vmov 0   ;;  %vm556_vm5 = vcmask 1043456   ;;  %v460_v23 = vld [vmem:[%s266_s18] sm:$0xf]  ;;  %s778_s24 = sshll.u32 %s1049_s15, 6 }
  0x7a   : > { %v315_v5 = vmul.f32 0.35355338, %v314_v4  ;;  %vm519_vm4 = vcmp.le.s32.totalorder %v516_v11, %v511_v10  ;;  %873 = vset.pattern.permute.xlu0 %v1065_v18  ;;  %874 = vset.pattern.permute.xlu1 %v1065_v18  ;;  %v558_v24 = vsel %vm556_vm5, %v460_v23, 0  ;;  %s298_s7 = scalar_lea.vmem [#allocation12], %s1281_s8  ;;  %s1313_s9 = scalar_lea.hbm %s1365_s3, %s778_s24 }
  0x7b   : > { %792 = vmatpush3.bf16.msra.mxu1 %v558_v24  ;;  %s630_s20 = sshll.u32 %s298_s7, 4  ;;  %s616_s22 = scalar_lea.sflag [#allocation8], %s1278_s21  ;;  %s1315_s20 = int_to_ptr.vmem [resolvable:$true] %s630_s20 }
  0x7c   : > { %v316_v6 = vpack.c.bf16 %v315_v5, %v315_v5  ;;  %s971_s28 = scalar_lea.vmem %s1315_s20, 64  ;;  %p1388_p7 = scmp.ne.s32.totalorder %s1376_s25, 0 }
  0x7d   : > { %p972_p3 = scmp.ne.s32.totalorder %s1315_s20, %s971_s28  ;;  %s1066_s15 = smov [#allocation12]  }
  0x7e   : > { %318 = vst.msk [vmem:[#allocation5] sm:$0xf] %vm317_vm2, %v316_v6  ;;  %v545_v38 = vld [vmem:[#allocation4] sm:$0xff]  ;;  %s975_s30 = sshll.u32 %s1066_s15, 4  ;;  %s976_s30 = int_to_ptr.vmem [resolvable:$false] %s975_s30 }
  0x7f   : > { %v537_v33 = vld [vmem:[#allocation3] sm:$0xff]  ;;  %p973_p0 = pnand %p972_p3, %p1388_p7  ;;  %s977_s1 = scalar_lea.vmem %s976_s30, 128 }
  0x80   : > { %v521_v19 = vld [vmem:[#allocation2] sm:$0xff]  ;;  %p978_p8 = scmp.lt.s32.totalorder %s1315_s20, %s976_s30  ;;  %p979_p9 = scmp.lt.s32.totalorder %s977_s1, %s971_s28 }
  0x81   : > { %p974_p1 = pneg %p973_p0 }
  0x82   : > { %p980_p10 = por %p979_p9, %p978_p8 }
  0x84   : > { %p981_p12 = pnand %p980_p10, %p974_p1 }
  0x85   : > { %v461_v7 = vld [vmem:[#allocation5] sm:$0xf] }
  0x86   : > { %788 = vmatmul.mubr.msk.bf16.vlgmr.msra.gmra.mrb[0].mxu0 %vm311_vm0, %v461_v7 }
 0x159   : > { %v503_v12 = vpop.f32.mrb[0].mxu0 }
 0x15a   : > { %v520_v13 = vsel %vm519_vm4, %v503_v12, -1e+30  ;;  %v789_v14 = vpop.f32.mrb[1].mxu0 }
 0x15b   : > { %v506_v15 = vpop.f32.mrb[2].mxu0  ;;  %v522_v16 = vsel %vm311_vm0, %v520_v13, -inf }
 0x15c   : > { %523 = vmax.xlane.f32.xlu0 %v522_v16  ;;  %v790_v17 = vpop.f32.mrb[3].mxu0 }
 0x1e9   : > { %v524_v20 = vpop.xlane.xlu0 %523 }
 0x1ea   : > { %v525_v21 = vmax.f32 %v521_v19, %v524_v20 }
 0x1ec   : > { %v526_v22 = vsub.f32 %v521_v19, %v525_v21  ;;  %602 = vst.msk [vmem:[#allocation2] sm:$0xff] %vm308_vm3, %v525_v21  ;;  %531 = vperm.xlu0 %873, %v525_v21  }
 0x1ee   : > { %v527_v31 = vmul.f32 1.442695, %v526_v22 }
 0x26b   : > { %v532_v25 = vpop.permute.xlu0 %531 }
 0x26c   : > { %v534_v26 = vsub.f32 %v520_v13, %v532_v25 }
 0x26e   : > { %v535_v27 = vmul.f32 1.442695, %v534_v26 }
 0x270   : > { %875 = vpow2.f32 %v535_v27 }
 0x271   : > { %877 = vpow2.f32 %v527_v31 }
 0x27a   : > { %v876_v28 = vpop.eup %875 }
 0x27b   : > { %v539_v29 = vsel %vm311_vm0, %v876_v28, 0.0  ;;  %v552_v30 = vpack.c.bf16 %v876_v28, %v876_v28  ;;  %v878_v32 = vpop.eup %877 }
 0x27c   : > { %540 = vadd.xlane.f32.xlu1 %v539_v29  ;;  %v538_v34 = vmul.f32 %v878_v32, %v537_v33 }
 0x27d   : > { %794 = vmatmul.mubr.msk.bf16.vlgmr.msra.gmra.mrb[0].mxu1 %vm311_vm0, %v552_v30 }
 0x28d   : > { %548 = vperm.xlu1 %874, %v878_v32  }
 0x309   : > { %v541_v35 = vpop.xlane.xlu1 %540 }
 0x30a   : > { %v542_v36 = vadd.f32 %v541_v35, %v538_v34 }
 0x30c   : > { %544 = vst.msk [vmem:[#allocation3] sm:$0xff] %vm308_vm3, %v542_v36 }
 0x30d   : > { %v549_v39 = vpop.permute.xlu1 %548 }
 0x30e   : > { %v551_v40 = vmul.f32 %v549_v39, %v545_v38 }
 0x313   : > { %v604_v37 = vld [vmem:[#allocation3] sm:$0xff] }
 0x314   : > { %607 = vperm.xlu1 %874, %v604_v37  }
 0x350   : > { %v594_v41 = vpop.f32.mrb[0].mxu1 }
 0x351   : > { %v600_v42 = vadd.f32 %v594_v41, %v551_v40  ;;  %v795_v43 = vpop.f32.mrb[1].mxu1 }
 0x352   : > { %v597_v44 = vpop.f32.mrb[2].mxu1 }
 0x353   : > { %601 = vst.msk [vmem:[#allocation4] sm:$0xff] %vm311_vm0, %v600_v42  ;;  %v796_v45 = vpop.f32.mrb[3].mxu1 }
 0x35a   : > { %v603_v48 = vld [vmem:[#allocation4] sm:$0xff] }
 0x393   : > { %v608_v46 = vpop.permute.xlu1 %607 }
 0x394   : > { %879 = vrcp.f32 %v608_v46 }
 0x39e   : > { %v880_v47 = vpop.eup %879 }
 0x39f   : > { %v611_v49 = vmul.f32 %v880_v47, %v603_v48 }
 0x3a1   : > { %v612_v50 = vpack.c.bf16 %v611_v49, %v611_v49 }
 0x3a3   : > { %614 = vst.msk [vmem:[%s298_s7] sm:$0xf] %vm317_vm2, %v612_v50 }
 0x3a4   : > { %984 = shalt.err (!%p981_p12)
}
 0x3a5   : > { %s985_s29 = scalar_lea.hbm %s1313_s9, 64  ;;  %s989_s21 = scalar_lea.hbm %s1365_s3, 512 }
 0x3a6   : > { %p986_p11 = scmp.ne.s32.totalorder %s1313_s9, %s985_s29  ;;  %p990_p6 = scmp.lt.u32.totalorder %s1313_s9, %s1365_s3 }
 0x3a7   : > { %p991_p2 = scmp.lt.u32.totalorder %s989_s21, %s985_s29  ;;  %p993_p3 = scmp.lt.u32.totalorder %s985_s29, %s1313_s9 }
 0x3a8   : > { %p987_p5 = pnand %p986_p11, %p1388_p7 }
 0x3a9   : > { %p992_p13 = por %p991_p2, %p990_p6 }
 0x3aa   : > { %p988_p4 = pneg %p987_p5 }
 0x3ab   : > { %p994_p0 = por %p993_p3, %p992_p13 }
 0x3ad   : > { %p995_p1 = pnand %p994_p0, %p988_p4 }
 0x3af   : > { %998 = shalt.err (!%p995_p1)
}
 0x3b0   : > { %803 = dma.vmem_to_hbm [thread:$0]  (%p1388_p7), %s1315_s20, 64, %s1313_s9, %s616_s22  }
 0x3b1 PF: > { %p820_p8 = scmp.ge.s32.totalorder %s1057_s17, 2  ;;  %s642_s16 = sand.u32 1, %s1037_s12  }
 0x3b2   : > { %p1389_p9 = scmp.ne.s32.totalorder %s1378_s27, 0  ;;  %s643_s4 = scalar_lea.sflag [#allocation8], %s642_s16 }
 0x3b4   : > { %p816_p10 = pnand %p820_p8, %p1389_p9 }
 0x3b6   : > { %1032 = dma.done.wait (!%p816_p10), %s643_s4, 64  }
 0x3b7   : > { %1034 = vsyncadd (!%p816_p10), %s643_s4, 4294967232  ;;  %s22_s17 = sadd.s32 1, %s1057_s17   ;;  %s1390_s25 = sld [smem:[#allocation18_spill]] }
 0x3b8   : > { %p19_p12 = scmp.ge.s32.totalorder %s22_s17, 10   ;;  %s1391_s15 = sld [smem:[#allocation16_spill]] }
 0x3b9   : > { %s1392_s16 = sld [smem:[#allocation17_spill]]  ;;  %s1393_s12 = smov %s1041_s13 }
 0x3ba   : > { %s1394_s13 = smov %s1045_s14  ;;  %21 = sbr.rel (!%p19_p12) target bundleno = 10 (0xa), region = 113 }
 0x3bd   : > { %s1395_s14 = smov %s1390_s25 }
 0x3c1   :  { %648 = vsyncpa [#allocation7], 1 }
 0x3c2   :  { %650 = vsyncpa [#allocation7 + $0x1], 1 }
 0x3c3   :  { %651 = vsyncpa [#allocation10], 1 }
 0x3c4   :  { %653 = vsyncpa [#allocation10 + $0x1], 1 }
 0x3c5   :  { %654 = vsyncpa [#allocation8], 1 }
 0x3c6   :  { %656 = vsyncpa [#allocation8 + $0x1], 1 }

// kernel: gpt_forward.19
= control target key start
LH: loop header
LB: loop body
LE: loop exit
PB: predicated region body
PF: predicated region fallthrough
CT: control target
= control target key end

     0   :  { %9 = vsyncpa [#allocation3], 0  ;;  %s457_s0 = inlined_call_operand.hbm [shape: bf16[16,32], index: 0, kind: input, shape index: {}]   ;;  %s458_s1 = inlined_call_operand.hbm [shape: bf16[32,32], index: 1, kind: input, shape index: {}]   ;;  %s459_s2 = inlined_call_operand.hbm [shape: f32[1,32], index: 2, kind: input, shape index: {}]   ;;  %s460_s3 = inlined_call_operand.hbm [shape: bf16[16,32], index: 3, kind: input, shape index: {}]   ;;  %s461_s4 = inlined_call_operand.hbm [shape: bf16[16,32], index: 4, kind: output, shape index: {}]  }
   0x1   :  { %10 = vsyncpa [#allocation6], 0 }
   0x2   :  { %11 = vsyncpa [#allocation9], 0 }
   0x3   :  { %12 = vsyncpa [#allocation4], 0  ;;  %s337_s15 = smov [#allocation5]   ;;  %s338_s17 = smov [#allocation2]  }
   0x4   :  { %s30_s16 = sshll.u32 %s337_s15, 4  ;;  %s18_s18 = sshll.u32 %s338_s17, 4  ;;  %s31_s16 = int_to_ptr.vmem [resolvable:$true] %s30_s16  ;;  %s371_s18 = int_to_ptr.vmem [resolvable:$true] %s18_s18 }
   0x5   :  { %s219_s21 = scalar_lea.hbm %s458_s1, 256 }
   0x6   :  { %p220_p0 = scmp.ne.s32.totalorder %s458_s1, %s219_s21  ;;  %p223_p1 = scmp.lt.u32.totalorder %s219_s21, %s458_s1 }
   0x8   :  { %p225_p2 = pnand %p223_p1, %p220_p0 }
   0xa   :  { %228 = shalt.err (!%p225_p2)
}
   0xb   :  { %s229_s26 = scalar_lea.vmem %s31_s16, 256  ;;  %p234_p4 = scmp.lt.s32.totalorder %s31_s16, %s31_s16 }
   0xc   :  { %p230_p3 = scmp.ne.s32.totalorder %s31_s16, %s229_s26  ;;  %p235_p5 = scmp.lt.s32.totalorder %s229_s26, %s229_s26 }
   0xe   :  { %p236_p6 = por %p235_p5, %p234_p4 }
  0x10   :  { %p237_p7 = pnand %p236_p6, %p230_p3 }
  0x12   :  { %240 = shalt.err (!%p237_p7)
}
  0x13   :  { %s339_s27 = smov 64   ;;  %s340_s28 = smov 4  }
  0x14   :  { %36 = dma.hbm_to_vmem [thread:$0]  %s458_s1, 256, %s31_s16, [#allocation6], %s339_s27, %s339_s27, %s340_s28  }
  0x15   :  { %s241_s7 = scalar_lea.hbm %s457_s0, 128 }
  0x16   :  { %p242_p8 = scmp.ne.s32.totalorder %s457_s0, %s241_s7  ;;  %p245_p9 = scmp.lt.u32.totalorder %s241_s7, %s457_s0 }
  0x18   :  { %p247_p10 = pnand %p245_p9, %p242_p8 }
  0x1a   :  { %250 = shalt.err (!%p247_p10)
}
  0x1b   :  { %s251_s12 = scalar_lea.vmem %s371_s18, 128  ;;  %p256_p12 = scmp.lt.s32.totalorder %s371_s18, %s371_s18 }
  0x1c   :  { %p252_p11 = scmp.ne.s32.totalorder %s371_s18, %s251_s12  ;;  %p257_p13 = scmp.lt.s32.totalorder %s251_s12, %s251_s12 }
  0x1e   :  { %p258_p0 = por %p257_p13, %p256_p12 }
  0x20   :  { %p259_p1 = pnand %p258_p0, %p252_p11 }
  0x22   :  { %262 = shalt.err (!%p259_p1)
}
  0x23   :  { %24 = dma.hbm_to_vmem [thread:$0]  %s457_s0, 128, %s371_s18, [#allocation3], %s339_s27, %s339_s27, %s340_s28  }
  0x24   :  { %s341_s14 = smov [#allocation7]   ;;  %s342_s16 = smov [#allocation8]  }
  0x25   :  { %s43_s15 = sshll.u32 %s341_s14, 4  ;;  %s52_s17 = sshll.u32 %s342_s16, 4  ;;  %s44_s15 = int_to_ptr.vmem [resolvable:$true] %s43_s15  ;;  %s408_s17 = int_to_ptr.vmem [resolvable:$true] %s52_s17 }
  0x26   :  { %s263_s21 = scalar_lea.hbm %s459_s2, 16 }
  0x27   :  { %p264_p2 = scmp.ne.s32.totalorder %s459_s2, %s263_s21  ;;  %p267_p3 = scmp.lt.u32.totalorder %s263_s21, %s459_s2 }
  0x29   :  { %p269_p4 = pnand %p267_p3, %p264_p2 }
  0x2b   :  { %272 = shalt.err (!%p269_p4)
}
  0x2c   :  { %s273_s0 = scalar_lea.vmem %s44_s15, 16  ;;  %s277_s18 = scalar_lea.vmem %s44_s15, 32 }
  0x2d   :  { %p274_p5 = scmp.ne.s32.totalorder %s44_s15, %s273_s0  ;;  %p278_p6 = scmp.lt.s32.totalorder %s44_s15, %s44_s15 }
  0x2e   :  { %p279_p7 = scmp.lt.s32.totalorder %s277_s18, %s273_s0 }
  0x30   :  { %p280_p8 = por %p279_p7, %p278_p6 }
  0x32   :  { %p281_p9 = pnand %p280_p8, %p274_p5 }
  0x34   :  { %284 = shalt.err (!%p281_p9)
}
  0x35   :  { %46 = dma.hbm_to_vmem [thread:$0]  %s459_s2, 16, %s44_s15, [#allocation6]  }
  0x36   :  { %s285_s6 = scalar_lea.hbm %s460_s3, 128 }
  0x37   :  { %p286_p10 = scmp.ne.s32.totalorder %s460_s3, %s285_s6  ;;  %p289_p11 = scmp.lt.u32.totalorder %s285_s6, %s460_s3 }
  0x39   :  { %p291_p12 = pnand %p289_p11, %p286_p10 }
  0x3b   :  { %294 = shalt.err (!%p291_p12)
}
  0x3c   :  { %s295_s11 = scalar_lea.vmem %s408_s17, 128  ;;  %p300_p0 = scmp.lt.s32.totalorder %s408_s17, %s408_s17 }
  0x3d   :  { %p296_p13 = scmp.ne.s32.totalorder %s408_s17, %s295_s11  ;;  %p301_p1 = scmp.lt.s32.totalorder %s295_s11, %s295_s11 }
  0x3f   :  { %p302_p2 = por %p301_p1, %p300_p0 }
  0x41   :  { %p303_p3 = pnand %p302_p2, %p296_p13 }
  0x43   :  { %306 = shalt.err (!%p303_p3)
}
  0x44   :  { %58 = dma.hbm_to_vmem [thread:$0]  %s460_s3, 128, %s408_s17, [#allocation9], %s339_s27, %s339_s27, %s340_s28  }
  0x45   :  { %329 = dma.done.wait [#allocation3], 128  }
  0x46   :  { %330 = vsyncadd [#allocation3], 4294967168 }
  0x47   :  { %331 = dma.done.wait [#allocation6], 272  }
  0x48   :  { %332 = vsyncadd [#allocation6], 4294967024 }
  0x49   :  { %333 = dma.done.wait [#allocation9], 128  }
  0x4a   :  { %334 = vsyncadd [#allocation9], 4294967168  ;;  %v343_v0 = vmov 0.0   ;;  %vm344_vm0 = vmmov 0   ;;  %v216_v1 = vld [vmem:[#allocation5] sm:$0xff]   ;;  %v217_v2 = vld [vmem:[#allocation5 + $0x8] sm:$0xff]  }
  0x4b   :  { %199 = vmatprep.subr.bf16.mxu0 %v343_v0  ;;  %203 = vmatprep.mubr.msk.bf16.mxu0 %vm344_vm0, %v343_v0  ;;  %v218_v3 = vld [vmem:[#allocation2] sm:$0xff]   ;;  %vm102_vm1 = vcmask 261120   ;;  %v183_v5 = vld [vmem:[#allocation7] ss:$0 sm:$0xff]  ;;  %vm161_vm2 = vcmask 257024   ;;  %s345_s3 = smov [#allocation10]  }
  0x4c   :  { %200 = vmatpush3.bf16.msra.mxu0 %v216_v1  ;;  %v193_v4 = vld [vmem:[#allocation8] sm:$0xff]   ;;  %s169_s1 = sshll.u32 %s345_s3, 4  ;;  %s170_s1 = int_to_ptr.vmem [resolvable:$true] %s169_s1 }
  0x4d   :  { %201 = vmatprep.subr.bf16.mxu0 %v343_v0  ;;  %v194_v6 = vunpack.c.l.bf16 %v193_v4  ;;  %v195_v10 = vunpack.c.h.bf16 %v193_v4  ;;  %s307_s13 = scalar_lea.vmem %s170_s1, 128  ;;  %p312_p5 = scmp.lt.s32.totalorder %s170_s1, %s170_s1 }
  0x4e   :  { %p308_p4 = scmp.ne.s32.totalorder %s170_s1, %s307_s13  ;;  %p313_p6 = scmp.lt.s32.totalorder %s307_s13, %s307_s13 }
  0x50   :  { %202 = vmatpush3.bf16.msra.mxu0 %v217_v2  ;;  %p314_p7 = por %p313_p6, %p312_p5 }
  0x52   :  { %p315_p8 = pnand %p314_p7, %p308_p4 }
  0x53   :  { %204 = vmatmul.mubr.msk.bf16.vlgmr.msra.gmra.mrb[0].mxu0 %vm102_vm1, %v218_v3 }
 0x126   :  { %v140_v7 = vpop.f32.mrb[0].mxu0 }
 0x127   :  { %v141_v8 = vadd.f32 %v183_v5, %v140_v7  ;;  %v205_v9 = vpop.f32.mrb[1].mxu0 }
 0x128   :  { %v143_v11 = vpop.f32.mrb[2].mxu0 }
 0x129   :  { %v151_v12 = vadd.f32 %v194_v6, %v141_v8  ;;  %v144_v13 = vadd.f32 %v183_v5, %v143_v11  ;;  %v206_v14 = vpop.f32.mrb[3].mxu0 }
 0x12b   :  { %v190_v15 = vpack.c.bf16 %v151_v12, %v151_v12  ;;  %v152_v16 = vadd.f32 %v195_v10, %v144_v13 }
 0x12d   :  { %v191_v17 = vpack.c.bf16 %v152_v16, %v152_v16  ;;  %162 = vst.msk [vmem:[#allocation10] sm:$0xf] %vm161_vm2, %v190_v15 }
 0x12f   :  { %163 = vst.msk [vmem:[#allocation10 + $0x4] sm:$0xf] %vm161_vm2, %v191_v17 }
 0x130   :  { %318 = shalt.err (!%p315_p8)
}
 0x131   :  { %s319_s16 = scalar_lea.hbm %s461_s4, 128 }
 0x132   :  { %p320_p9 = scmp.ne.s32.totalorder %s461_s4, %s319_s16  ;;  %p323_p10 = scmp.lt.u32.totalorder %s319_s16, %s461_s4 }
 0x134   :  { %p325_p11 = pnand %p323_p10, %p320_p9 }
 0x136   :  { %328 = shalt.err (!%p325_p11)
}
 0x137   :  { %175 = dma.vmem_to_hbm [thread:$0]  %s170_s1, 128, %s461_s4, [#allocation4], %s339_s27, %s339_s27, %s340_s28  }
 0x138   :  { %335 = dma.done.wait [#allocation4], 128  }
 0x139   :  { %336 = vsyncadd [#allocation4], 4294967168 }
 0x13a   :  { %179 = vsyncpa [#allocation3], 1 }
 0x13b   :  { %180 = vsyncpa [#allocation6], 1 }
 0x13c   :  { %181 = vsyncpa [#allocation9], 1 }
 0x13d   :  { %182 = vsyncpa [#allocation4], 1 }

// kernel: gpt_forward.21
= control target key start
LH: loop header
LB: loop body
LE: loop exit
PB: predicated region body
PF: predicated region fallthrough
CT: control target
= control target key end

     0   :  { %8 = vsyncpa [#allocation3], 0  ;;  %s402_s0 = inlined_call_operand.hbm [shape: bf16[16,32], index: 0, kind: input, shape index: {}]   ;;  %s403_s1 = inlined_call_operand.hbm [shape: bf16[32,128], index: 1, kind: input, shape index: {}]   ;;  %s404_s2 = inlined_call_operand.hbm [shape: f32[1,128], index: 2, kind: input, shape index: {}]   ;;  %s405_s3 = inlined_call_operand.hbm [shape: bf16[16,128], index: 3, kind: output, shape index: {}]  }
   0x1   :  { %9 = vsyncpa [#allocation6], 0 }
   0x2   :  { %10 = vsyncpa [#allocation4], 0  ;;  %s310_s12 = smov [#allocation5]   ;;  %s311_s14 = smov [#allocation2]  }
   0x3   :  { %s28_s13 = sshll.u32 %s310_s12, 4  ;;  %s16_s15 = sshll.u32 %s311_s14, 4  ;;  %s29_s13 = int_to_ptr.vmem [resolvable:$true] %s28_s13  ;;  %s338_s15 = int_to_ptr.vmem [resolvable:$true] %s16_s15 }
   0x4   :  { %s216_s18 = scalar_lea.hbm %s403_s1, 256 }
   0x5   :  { %p217_p0 = scmp.ne.s32.totalorder %s403_s1, %s216_s18  ;;  %p220_p1 = scmp.lt.u32.totalorder %s216_s18, %s403_s1 }
   0x7   :  { %p222_p2 = pnand %p220_p1, %p217_p0 }
   0x9   :  { %225 = shalt.err (!%p222_p2)
}
   0xa   :  { %s226_s23 = scalar_lea.vmem %s29_s13, 256  ;;  %p231_p4 = scmp.lt.s32.totalorder %s29_s13, %s29_s13 }
   0xb   :  { %p227_p3 = scmp.ne.s32.totalorder %s29_s13, %s226_s23  ;;  %p232_p5 = scmp.lt.s32.totalorder %s226_s23, %s226_s23 }
   0xd   :  { %p233_p6 = por %p232_p5, %p231_p4 }
   0xf   :  { %p234_p7 = pnand %p233_p6, %p227_p3 }
  0x11   :  { %237 = shalt.err (!%p234_p7)
}
  0x12   :  { %s312_s24 = smov 64   ;;  %s313_s25 = smov 4  }
  0x13   :  { %34 = dma.hbm_to_vmem [thread:$0]  %s403_s1, 256, %s29_s13, [#allocation6], %s312_s24, %s312_s24, %s313_s25  }
  0x14   :  { %s238_s30 = scalar_lea.hbm %s402_s0, 128 }
  0x15   :  { %p239_p8 = scmp.ne.s32.totalorder %s402_s0, %s238_s30  ;;  %p242_p9 = scmp.lt.u32.totalorder %s238_s30, %s402_s0 }
  0x17   :  { %p244_p10 = pnand %p242_p9, %p239_p8 }
  0x19   :  { %247 = shalt.err (!%p244_p10)
}
  0x1a   :  { %s248_s8 = scalar_lea.vmem %s338_s15, 128  ;;  %p253_p12 = scmp.lt.s32.totalorder %s338_s15, %s338_s15 }
  0x1b   :  { %p249_p11 = scmp.ne.s32.totalorder %s338_s15, %s248_s8  ;;  %p254_p13 = scmp.lt.s32.totalorder %s248_s8, %s248_s8 }
  0x1d   :  { %p255_p0 = por %p254_p13, %p253_p12 }
  0x1f   :  { %p256_p1 = pnand %p255_p0, %p249_p11 }
  0x21   :  { %259 = shalt.err (!%p256_p1)
}
  0x22   :  { %22 = dma.hbm_to_vmem [thread:$0]  %s402_s0, 128, %s338_s15, [#allocation3], %s312_s24, %s312_s24, %s313_s25  }
  0x23   :  { %s314_s10 = smov [#allocation7]   ;;  %s260_s14 = scalar_lea.hbm %s404_s2, 16 }
  0x24   :  { %s41_s11 = sshll.u32 %s314_s10, 4  ;;  %p261_p2 = scmp.ne.s32.totalorder %s404_s2, %s260_s14  ;;  %s42_s11 = int_to_ptr.vmem [resolvable:$true] %s41_s11 }
  0x25   :  { %p264_p3 = scmp.lt.u32.totalorder %s260_s14, %s404_s2 }
  0x27   :  { %p266_p4 = pnand %p264_p3, %p261_p2 }
  0x29   :  { %269 = shalt.err (!%p266_p4)
}
  0x2a   :  { %s270_s20 = scalar_lea.vmem %s42_s11, 16  ;;  %s274_s0 = scalar_lea.vmem %s42_s11, 32 }
  0x2b   :  { %p271_p5 = scmp.ne.s32.totalorder %s42_s11, %s270_s20  ;;  %p275_p6 = scmp.lt.s32.totalorder %s42_s11, %s42_s11 }
  0x2c   :  { %p276_p7 = scmp.lt.s32.totalorder %s274_s0, %s270_s20 }
  0x2e   :  { %p277_p8 = por %p276_p7, %p275_p6 }
  0x30   :  { %p278_p9 = pnand %p277_p8, %p271_p5 }
  0x32   :  { %281 = shalt.err (!%p278_p9)
}
  0x33   :  { %44 = dma.hbm_to_vmem [thread:$0]  %s404_s2, 16, %s42_s11, [#allocation6]  }
  0x34   :  { %304 = dma.done.wait [#allocation3], 128  }
  0x35   :  { %305 = vsyncadd [#allocation3], 4294967168 }
  0x36   :  { %306 = dma.done.wait [#allocation6], 272  }
  0x37   :  { %307 = vsyncadd [#allocation6], 4294967024  ;;  %v315_v0 = vmov 0.0   ;;  %vm316_vm0 = vmmov 0   ;;  %v209_v1 = vld [vmem:[#allocation5] sm:$0xff]   ;;  %v210_v2 = vld [vmem:[#allocation5 + $0x8] sm:$0xff]  }
  0x38   :  { %193 = vmatprep.subr.bf16.mxu0 %v315_v0  ;;  %197 = vmatprep.mubr.msk.bf16.mxu0 %vm316_vm0, %v315_v0  ;;  %v211_v3 = vld [vmem:[#allocation2] sm:$0xff]   ;;  %vm85_vm1 = vcmask 261120   ;;  %v176_v4 = vld [vmem:[#allocation7] ss:$0 sm:$0xff]  ;;  %s317_s2 = smov [#allocation8]  }
  0x39   :  { %194 = vmatpush3.bf16.msra.mxu0 %v209_v1  ;;  %s163_s22 = sshll.u32 %s317_s2, 4  ;;  %s164_s22 = int_to_ptr.vmem [resolvable:$true] %s163_s22 }
  0x3a   :  { %195 = vmatprep.subr.bf16.mxu0 %v315_v0  ;;  %s282_s23 = scalar_lea.vmem %s164_s22, 128  ;;  %p287_p11 = scmp.lt.s32.totalorder %s164_s22, %s164_s22 }
  0x3b   :  { %p283_p10 = scmp.ne.s32.totalorder %s164_s22, %s282_s23  ;;  %p288_p12 = scmp.lt.s32.totalorder %s282_s23, %s282_s23 }
  0x3d   :  { %196 = vmatpush3.bf16.msra.mxu0 %v210_v2  ;;  %p289_p13 = por %p288_p12, %p287_p11 }
  0x3f   :  { %p290_p0 = pnand %p289_p13, %p283_p10 }
  0x40   :  { %198 = vmatmul.mubr.msk.bf16.vlgmr.msra.gmra.mrb[0].mxu0 %vm85_vm1, %v211_v3 }
 0x113   :  { %v123_v5 = vpop.f32.mrb[0].mxu0 }
 0x114   :  { %v124_v6 = vadd.f32 %v176_v4, %v123_v5  ;;  %v199_v7 = vpop.f32.mrb[1].mxu0 }
 0x115   :  { %v126_v8 = vpop.f32.mrb[2].mxu0 }
 0x116   :  { %v132_v9 = vmul.f32 0.044715, %v124_v6  ;;  %v127_v10 = vadd.f32 %v176_v4, %v126_v8  ;;  %v200_v11 = vpop.f32.mrb[3].mxu0  ;;  %v130_v24 = vmul.f32 0.5, %v124_v6 }
 0x118   :  { %v134_v12 = vmul.f32 %v132_v9, %v124_v6  ;;  %v133_v13 = vmul.f32 0.044715, %v127_v10  ;;  %v131_v25 = vmul.f32 0.5, %v127_v10 }
 0x11a   :  { %v136_v14 = vmul.f32 %v134_v12, %v124_v6  ;;  %v135_v15 = vmul.f32 %v133_v13, %v127_v10 }
 0x11c   :  { %v137_v16 = vmul.f32 %v135_v15, %v127_v10  ;;  %v138_v17 = vadd.f32 %v136_v14, %v124_v6 }
 0x11e   :  { %v139_v18 = vadd.f32 %v137_v16, %v127_v10  ;;  %v140_v19 = vmul.f32 0.7978846, %v138_v17 }
 0x120   :  { %v141_v20 = vmul.f32 0.7978846, %v139_v18  ;;  %212 = vtanh.f32 %v140_v19 }
 0x122   :  { %214 = vtanh.f32 %v141_v20 }
 0x12a   :  { %v213_v21 = vpop.eup %212 }
 0x12b   :  { %v144_v22 = vadd.f32 1.0, %v213_v21 }
 0x12c   :  { %v215_v23 = vpop.eup %214 }
 0x12d   :  { %v145_v26 = vadd.f32 1.0, %v215_v23  ;;  %v146_v27 = vmul.f32 %v144_v22, %v130_v24 }
 0x12f   :  { %v147_v28 = vmul.f32 %v145_v26, %v131_v25 }
 0x131   :  { %v188_v29 = vpack.c.bf16 %v147_v28, %v146_v27 }
 0x133   :  { %189 = vst [vmem:[#allocation8] sm:$0xff] %v188_v29  }
 0x134   :  { %293 = shalt.err (!%p290_p0)
}
 0x135   :  { %s294_s28 = scalar_lea.hbm %s405_s3, 128 }
 0x136   :  { %p295_p1 = scmp.ne.s32.totalorder %s405_s3, %s294_s28  ;;  %p298_p2 = scmp.lt.u32.totalorder %s294_s28, %s405_s3 }
 0x138   :  { %p300_p3 = pnand %p298_p2, %p295_p1 }
 0x13a   :  { %303 = shalt.err (!%p300_p3)
}
 0x13b   :  { %169 = dma.vmem_to_hbm [thread:$0]  %s164_s22, 128, %s405_s3, [#allocation4], %s312_s24, %s312_s24, %s313_s25  }
 0x13c   :  { %308 = dma.done.wait [#allocation4], 128  }
 0x13d   :  { %309 = vsyncadd [#allocation4], 4294967168 }
 0x13e   :  { %173 = vsyncpa [#allocation3], 1 }
 0x13f   :  { %174 = vsyncpa [#allocation6], 1 }
 0x140   :  { %175 = vsyncpa [#allocation4], 1 }

// kernel: gpt_forward.22
= control target key start
LH: loop header
LB: loop body
LE: loop exit
PB: predicated region body
PF: predicated region fallthrough
CT: control target
= control target key end

     0   :  { %9 = vsyncpa [#allocation3], 0  ;;  %s531_s0 = inlined_call_operand.hbm [shape: bf16[16,128], index: 0, kind: input, shape index: {}]   ;;  %s532_s1 = inlined_call_operand.hbm [shape: bf16[128,32], index: 1, kind: input, shape index: {}]   ;;  %s533_s2 = inlined_call_operand.hbm [shape: f32[1,32], index: 2, kind: input, shape index: {}]   ;;  %s534_s3 = inlined_call_operand.hbm [shape: bf16[16,32], index: 3, kind: input, shape index: {}]   ;;  %s535_s4 = inlined_call_operand.hbm [shape: bf16[16,32], index: 4, kind: output, shape index: {}]  }
   0x1   :  { %10 = vsyncpa [#allocation6], 0 }
   0x2   :  { %11 = vsyncpa [#allocation9], 0 }
   0x3   :  { %12 = vsyncpa [#allocation4], 0  ;;  %s411_s15 = smov [#allocation5]   ;;  %s412_s17 = smov [#allocation2]  }
   0x4   :  { %s30_s16 = sshll.u32 %s411_s15, 4  ;;  %s18_s18 = sshll.u32 %s412_s17, 4  ;;  %s31_s16 = int_to_ptr.vmem [resolvable:$true] %s30_s16  ;;  %s445_s18 = int_to_ptr.vmem [resolvable:$true] %s18_s18 }
   0x5   :  { %s293_s21 = scalar_lea.hbm %s532_s1, 1024 }
   0x6   :  { %p294_p0 = scmp.ne.s32.totalorder %s532_s1, %s293_s21  ;;  %p297_p1 = scmp.lt.u32.totalorder %s293_s21, %s532_s1 }
   0x8   :  { %p299_p2 = pnand %p297_p1, %p294_p0 }
   0xa   :  { %302 = shalt.err (!%p299_p2)
}
   0xb   :  { %s303_s26 = scalar_lea.vmem %s31_s16, 1024  ;;  %p308_p4 = scmp.lt.s32.totalorder %s31_s16, %s31_s16 }
   0xc   :  { %p304_p3 = scmp.ne.s32.totalorder %s31_s16, %s303_s26  ;;  %p309_p5 = scmp.lt.s32.totalorder %s303_s26, %s303_s26 }
   0xe   :  { %p310_p6 = por %p309_p5, %p308_p4 }
  0x10   :  { %p311_p7 = pnand %p310_p6, %p304_p3 }
  0x12   :  { %314 = shalt.err (!%p311_p7)
}
  0x13   :  { %s413_s27 = smov 64   ;;  %s414_s28 = smov 4  }
  0x14   :  { %36 = dma.hbm_to_vmem [thread:$0]  %s532_s1, 1024, %s31_s16, [#allocation6], %s413_s27, %s413_s27, %s414_s28  }
  0x15   :  { %s315_s7 = scalar_lea.hbm %s531_s0, 128 }
  0x16   :  { %p316_p8 = scmp.ne.s32.totalorder %s531_s0, %s315_s7  ;;  %p319_p9 = scmp.lt.u32.totalorder %s315_s7, %s531_s0 }
  0x18   :  { %p321_p10 = pnand %p319_p9, %p316_p8 }
  0x1a   :  { %324 = shalt.err (!%p321_p10)
}
  0x1b   :  { %s325_s12 = scalar_lea.vmem %s445_s18, 128  ;;  %p330_p12 = scmp.lt.s32.totalorder %s445_s18, %s445_s18 }
  0x1c   :  { %p326_p11 = scmp.ne.s32.totalorder %s445_s18, %s325_s12  ;;  %p331_p13 = scmp.lt.s32.totalorder %s325_s12, %s325_s12 }
  0x1e   :  { %p332_p0 = por %p331_p13, %p330_p12 }
  0x20   :  { %p333_p1 = pnand %p332_p0, %p326_p11 }
  0x22   :  { %336 = shalt.err (!%p333_p1)
}
  0x23   :  { %24 = dma.hbm_to_vmem [thread:$0]  %s531_s0, 128, %s445_s18, [#allocation3], %s413_s27, %s413_s27, %s414_s28  }
  0x24   :  { %s415_s14 = smov [#allocation7]   ;;  %s416_s16 = smov [#allocation8]  }
  0x25   :  { %s43_s15 = sshll.u32 %s415_s14, 4  ;;  %s52_s17 = sshll.u32 %s416_s16, 4  ;;  %s44_s15 = int_to_ptr.vmem [resolvable:$true] %s43_s15  ;;  %s482_s17 = int_to_ptr.vmem [resolvable:$true] %s52_s17 }
  0x26   :  { %s337_s21 = scalar_lea.hbm %s533_s2, 16 }
  0x27   :  { %p338_p2 = scmp.ne.s32.totalorder %s533_s2, %s337_s21  ;;  %p341_p3 = scmp.lt.u32.totalorder %s337_s21, %s533_s2 }
  0x29   :  { %p343_p4 = pnand %p341_p3, %p338_p2 }
  0x2b   :  { %346 = shalt.err (!%p343_p4)
}
  0x2c   :  { %s347_s0 = scalar_lea.vmem %s44_s15, 16  ;;  %s351_s18 = scalar_lea.vmem %s44_s15, 32 }
  0x2d   :  { %p348_p5 = scmp.ne.s32.totalorder %s44_s15, %s347_s0  ;;  %p352_p6 = scmp.lt.s32.totalorder %s44_s15, %s44_s15 }
  0x2e   :  { %p353_p7 = scmp.lt.s32.totalorder %s351_s18, %s347_s0 }
  0x30   :  { %p354_p8 = por %p353_p7, %p352_p6 }
  0x32   :  { %p355_p9 = pnand %p354_p8, %p348_p5 }
  0x34   :  { %358 = shalt.err (!%p355_p9)
}
  0x35   :  { %46 = dma.hbm_to_vmem [thread:$0]  %s533_s2, 16, %s44_s15, [#allocation6]  }
  0x36   :  { %s359_s6 = scalar_lea.hbm %s534_s3, 128 }
  0x37   :  { %p360_p10 = scmp.ne.s32.totalorder %s534_s3, %s359_s6  ;;  %p363_p11 = scmp.lt.u32.totalorder %s359_s6, %s534_s3 }
  0x39   :  { %p365_p12 = pnand %p363_p11, %p360_p10 }
  0x3b   :  { %368 = shalt.err (!%p365_p12)
}
  0x3c   :  { %s369_s11 = scalar_lea.vmem %s482_s17, 128  ;;  %p374_p0 = scmp.lt.s32.totalorder %s482_s17, %s482_s17 }
  0x3d   :  { %p370_p13 = scmp.ne.s32.totalorder %s482_s17, %s369_s11  ;;  %p375_p1 = scmp.lt.s32.totalorder %s369_s11, %s369_s11 }
  0x3f   :  { %p376_p2 = por %p375_p1, %p374_p0 }
  0x41   :  { %p377_p3 = pnand %p376_p2, %p370_p13 }
  0x43   :  { %380 = shalt.err (!%p377_p3)
}
  0x44   :  { %58 = dma.hbm_to_vmem [thread:$0]  %s534_s3, 128, %s482_s17, [#allocation9], %s413_s27, %s413_s27, %s414_s28  }
  0x45   :  { %403 = dma.done.wait [#allocation3], 128  }
  0x46   :  { %404 = vsyncadd [#allocation3], 4294967168 }
  0x47   :  { %405 = dma.done.wait [#allocation6], 1040  }
  0x48   :  { %406 = vsyncadd [#allocation6], 4294966256 }
  0x49   :  { %407 = dma.done.wait [#allocation9], 128  }
  0x4a   :  { %408 = vsyncadd [#allocation9], 4294967168  ;;  %v417_v0 = vmov 0.0   ;;  %vm418_vm0 = vmmov 0   ;;  %v284_v1 = vld [vmem:[#allocation5] sm:$0xff]   ;;  %v285_v2 = vld [vmem:[#allocation5 + $0x8] sm:$0xff]  }
  0x4b   :  { %255 = vmatprep.subr.bf16.mxu0 %v417_v0  ;;  %271 = vmatprep.mubr.msk.bf16.mxu0 %vm418_vm0, %v417_v0  ;;  %v286_v3 = vld [vmem:[#allocation5 + $0x10] sm:$0xff]   ;;  %v287_v4 = vld [vmem:[#allocation5 + $0x18] sm:$0xff]   ;;  %v288_v5 = vld [vmem:[#allocation5 + $0x20] sm:$0xff]   ;;  %vm206_vm1 = vcmask 257024   ;;  %s419_s3 = smov [#allocation10]  }
  0x4c   :  { %256 = vmatpush3.bf16.msra.mxu0 %v284_v1  ;;  %v289_v6 = vld [vmem:[#allocation5 + $0x28] sm:$0xff]   ;;  %v290_v7 = vld [vmem:[#allocation5 + $0x30] sm:$0xff]   ;;  %v291_v8 = vld [vmem:[#allocation5 + $0x38] sm:$0xff]   ;;  %s214_s1 = sshll.u32 %s419_s3, 4  ;;  %s215_s1 = int_to_ptr.vmem [resolvable:$true] %s214_s1 }
  0x4d   :  { %257 = vmatprep.subr.bf16.mxu0 %v417_v0  ;;  %v292_v9 = vld [vmem:[#allocation2] sm:$0xff]   ;;  %v243_v10 = vld [vmem:[#allocation8] sm:$0xff]   ;;  %v228_v11 = vld [vmem:[#allocation7] ss:$0 sm:$0xff]  ;;  %s381_s13 = scalar_lea.vmem %s215_s1, 128  ;;  %p386_p5 = scmp.lt.s32.totalorder %s215_s1, %s215_s1 }
  0x4e   :  { %v244_v12 = vunpack.c.l.bf16 %v243_v10  ;;  %v245_v16 = vunpack.c.h.bf16 %v243_v10  ;;  %p382_p4 = scmp.ne.s32.totalorder %s215_s1, %s381_s13  ;;  %p387_p6 = scmp.lt.s32.totalorder %s381_s13, %s381_s13 }
  0x50   :  { %258 = vmatpush3.bf16.msra.mxu0 %v285_v2  ;;  %p388_p7 = por %p387_p6, %p386_p5 }
  0x51   :  { %259 = vmatprep.subr.bf16.mxu0 %v417_v0 }
  0x52   :  { %p389_p8 = pnand %p388_p7, %p382_p4 }
  0x54   :  { %260 = vmatpush3.bf16.msra.mxu0 %v286_v3 }
  0x55   :  { %261 = vmatprep.subr.bf16.mxu0 %v417_v0 }
  0x58   :  { %262 = vmatpush3.bf16.msra.mxu0 %v287_v4 }
  0x59   :  { %263 = vmatprep.subr.bf16.mxu0 %v417_v0 }
  0x5c   :  { %264 = vmatpush3.bf16.msra.mxu0 %v288_v5 }
  0x5d   :  { %265 = vmatprep.subr.bf16.mxu0 %v417_v0 }
  0x60   :  { %266 = vmatpush3.bf16.msra.mxu0 %v289_v6 }
  0x61   :  { %267 = vmatprep.subr.bf16.mxu0 %v417_v0 }
  0x64   :  { %268 = vmatpush3.bf16.msra.mxu0 %v290_v7 }
  0x65   :  { %269 = vmatprep.subr.bf16.mxu0 %v417_v0 }
  0x68   :  { %270 = vmatpush3.bf16.msra.mxu0 %v291_v8 }
  0x6b   :  { %272 = vmatmul.mubr.bf16.vlgmr.msra.gmra.mrb[0].mxu0 %v292_v9 }
 0x13e   :  { %v185_v13 = vpop.f32.mrb[0].mxu0 }
 0x13f   :  { %v186_v14 = vadd.f32 %v228_v11, %v185_v13  ;;  %v273_v15 = vpop.f32.mrb[1].mxu0 }
 0x140   :  { %v188_v17 = vpop.f32.mrb[2].mxu0 }
 0x141   :  { %v196_v18 = vadd.f32 %v244_v12, %v186_v14  ;;  %v189_v19 = vadd.f32 %v228_v11, %v188_v17  ;;  %v274_v20 = vpop.f32.mrb[3].mxu0 }
 0x143   :  { %v240_v21 = vpack.c.bf16 %v196_v18, %v196_v18  ;;  %v197_v22 = vadd.f32 %v245_v16, %v189_v19 }
 0x145   :  { %v241_v23 = vpack.c.bf16 %v197_v22, %v197_v22  ;;  %207 = vst.msk [vmem:[#allocation10] sm:$0xf] %vm206_vm1, %v240_v21 }
 0x147   :  { %208 = vst.msk [vmem:[#allocation10 + $0x4] sm:$0xf] %vm206_vm1, %v241_v23 }
 0x148   :  { %392 = shalt.err (!%p389_p8)
}
 0x149   :  { %s393_s16 = scalar_lea.hbm %s535_s4, 128 }
 0x14a   :  { %p394_p9 = scmp.ne.s32.totalorder %s535_s4, %s393_s16  ;;  %p397_p10 = scmp.lt.u32.totalorder %s393_s16, %s535_s4 }
 0x14c   :  { %p399_p11 = pnand %p397_p10, %p394_p9 }
 0x14e   :  { %402 = shalt.err (!%p399_p11)
}
 0x14f   :  { %220 = dma.vmem_to_hbm [thread:$0]  %s215_s1, 128, %s535_s4, [#allocation4], %s413_s27, %s413_s27, %s414_s28  }
 0x150   :  { %409 = dma.done.wait [#allocation4], 128  }
 0x151   :  { %410 = vsyncadd [#allocation4], 4294967168 }
 0x152   :  { %224 = vsyncpa [#allocation3], 1 }
 0x153   :  { %225 = vsyncpa [#allocation6], 1 }
 0x154   :  { %226 = vsyncpa [#allocation9], 1 }
 0x155   :  { %227 = vsyncpa [#allocation4], 1 }

// kernel: gpt_forward.31
= control target key start
LH: loop header
LB: loop body
LE: loop exit
PB: predicated region body
PF: predicated region fallthrough
CT: control target
= control target key end

     0   :  { %7 = vsyncpa [#allocation3], 0  ;;  %s328_s0 = inlined_call_operand.hbm [shape: bf16[16,32], index: 0, kind: input, shape index: {}]   ;;  %s329_s1 = inlined_call_operand.hbm [shape: bf16[64,32], index: 1, kind: input, shape index: {}]   ;;  %s330_s2 = inlined_call_operand.hbm [shape: f32[16,64], index: 2, kind: output, shape index: {}]  }
   0x1   :  { %8 = vsyncpa [#allocation6], 0 }
   0x2   :  { %9 = vsyncpa [#allocation4], 0  ;;  %s263_s9 = smov [#allocation2]   ;;  %s191_s13 = scalar_lea.hbm %s328_s0, 128 }
   0x3   :  { %s15_s10 = sshll.u32 %s263_s9, 4  ;;  %p192_p0 = scmp.ne.s32.totalorder %s328_s0, %s191_s13  ;;  %s16_s10 = int_to_ptr.vmem [resolvable:$true] %s15_s10 }
   0x4   :  { %p195_p1 = scmp.lt.u32.totalorder %s191_s13, %s328_s0 }
   0x6   :  { %p197_p2 = pnand %p195_p1, %p192_p0 }
   0x8   :  { %200 = shalt.err (!%p197_p2)
}
   0x9   :  { %s201_s18 = scalar_lea.vmem %s16_s10, 128  ;;  %p206_p4 = scmp.lt.s32.totalorder %s16_s10, %s16_s10 }
   0xa   :  { %p202_p3 = scmp.ne.s32.totalorder %s16_s10, %s201_s18  ;;  %p207_p5 = scmp.lt.s32.totalorder %s201_s18, %s201_s18 }
   0xc   :  { %p208_p6 = por %p207_p5, %p206_p4 }
   0xe   :  { %p209_p7 = pnand %p208_p6, %p202_p3 }
  0x10   :  { %212 = shalt.err (!%p209_p7)
}
  0x11   :  { %s264_s19 = smov 64   ;;  %s265_s20 = smov 4  }
  0x12   :  { %21 = dma.hbm_to_vmem [thread:$0]  %s328_s0, 128, %s16_s10, [#allocation3], %s264_s19, %s264_s19, %s265_s20  }
  0x13   :  { %s266_s23 = smov [#allocation5]   ;;  %s213_s27 = scalar_lea.hbm %s329_s1, 512 }
  0x14   :  { %s27_s24 = sshll.u32 %s266_s23, 4  ;;  %p214_p8 = scmp.ne.s32.totalorder %s329_s1, %s213_s27  ;;  %s28_s24 = int_to_ptr.vmem [resolvable:$true] %s27_s24 }
  0x15   :  { %p217_p9 = scmp.lt.u32.totalorder %s213_s27, %s329_s1 }
  0x17   :  { %p219_p10 = pnand %p217_p9, %p214_p8 }
  0x19   :  { %222 = shalt.err (!%p219_p10)
}
  0x1a   :  { %s223_s4 = scalar_lea.vmem %s28_s24, 512  ;;  %p228_p12 = scmp.lt.s32.totalorder %s28_s24, %s28_s24 }
  0x1b   :  { %p224_p11 = scmp.ne.s32.totalorder %s28_s24, %s223_s4  ;;  %p229_p13 = scmp.lt.s32.totalorder %s223_s4, %s223_s4 }
  0x1d   :  { %p230_p0 = por %p229_p13, %p228_p12 }
  0x1f   :  { %p231_p1 = pnand %p230_p0, %p224_p11 }
  0x21   :  { %234 = shalt.err (!%p231_p1)
}
  0x22   :  { %33 = dma.hbm_to_vmem [thread:$0]  %s329_s1, 512, %s28_s24, [#allocation6], %s264_s19, %s264_s19, %s265_s20  }
  0x23   :  { %257 = dma.done.wait [#allocation3], 128  }
  0x24   :  { %258 = vsyncadd [#allocation3], 4294967168 }
  0x25   :  { %259 = dma.done.wait [#allocation6], 512  }
  0x26   :  { %260 = vsyncadd [#allocation6], 4294966784  ;;  %v267_v0 = vmov 0.0   ;;  %vm268_vm0 = vmmov 0   ;;  %vm76_vm1 = vcmask 261120   ;;  %v186_v1 = vld [vmem:[#allocation5] sm:$0xff]  }
  0x27   :  { %165 = vmatprep.subr.bf16.mxu0 %v267_v0  ;;  %173 = vmatprep.mubr.msk.bf16.mxu0 %vm268_vm0, %v267_v0  ;;  %v81_v2 = vsel %vm76_vm1, %v186_v1, 0  ;;  %v187_v3 = vld [vmem:[#allocation5 + $0x8] sm:$0xff]   ;;  %v188_v5 = vld [vmem:[#allocation5 + $0x10] sm:$0xff]   ;;  %v189_v7 = vld [vmem:[#allocation5 + $0x18] sm:$0xff]   ;;  %s269_s1 = smov [#allocation7]   ;;  %vm133_vm2 = vcmask 523264  }
  0x28   :  { %166 = vmatpush3.bf16.xpose.msra.mxu0 %v81_v2  ;;  %v84_v4 = vsel %vm76_vm1, %v187_v3, 0  ;;  %v87_v6 = vsel %vm76_vm1, %v188_v5, 0  ;;  %v90_v8 = vsel %vm76_vm1, %v189_v7, 0  ;;  %v190_v9 = vld [vmem:[#allocation2] sm:$0xff]   ;;  %s141_s6 = sshll.u32 %s269_s1, 4  ;;  %s142_s6 = int_to_ptr.vmem [resolvable:$true] %s141_s6 }
  0x29   :  { %167 = vmatprep.subr.bf16.mxu0 %v267_v0  ;;  %s235_s7 = scalar_lea.vmem %s142_s6, 256  ;;  %p240_p3 = scmp.lt.s32.totalorder %s142_s6, %s142_s6 }
  0x2a   :  { %p236_p2 = scmp.ne.s32.totalorder %s142_s6, %s235_s7  ;;  %p241_p4 = scmp.lt.s32.totalorder %s235_s7, %s235_s7 }
  0x2c   :  { %p242_p5 = por %p241_p4, %p240_p3 }
  0x2e   :  { %p243_p6 = pnand %p242_p5, %p236_p2 }
  0x30   :  { %168 = vmatpush3.bf16.xpose.msra.mxu0 %v84_v4 }
  0x31   :  { %169 = vmatprep.subr.bf16.mxu0 %v267_v0 }
  0x38   :  { %170 = vmatpush3.bf16.xpose.msra.mxu0 %v87_v6 }
  0x39   :  { %171 = vmatprep.subr.bf16.mxu0 %v267_v0 }
  0x40   :  { %172 = vmatpush3.bf16.xpose.msra.mxu0 %v90_v8 }
  0x47   :  { %174 = vmatmul.mubr.msk.bf16.vlgmr.msra.gmra.mrb[0].mxu0 %vm76_vm1, %v190_v9 }
 0x11a   :  { %v126_v10 = vpop.f32.mrb[0].mxu0 }
 0x11b   :  { %134 = vst.msk [vmem:[#allocation7] sm:$0xff] %vm133_vm2, %v126_v10  ;;  %v175_v11 = vpop.f32.mrb[1].mxu0 }
 0x11c   :  { %v129_v12 = vpop.f32.mrb[2].mxu0 }
 0x11d   :  { %135 = vst.msk [vmem:[#allocation7 + $0x8] sm:$0xff] %vm133_vm2, %v129_v12  ;;  %v176_v13 = vpop.f32.mrb[3].mxu0 }
 0x11e   :  { %246 = shalt.err (!%p243_p6)
}
 0x11f   :  { %s247_s10 = scalar_lea.hbm %s330_s2, 256 }
 0x120   :  { %p248_p7 = scmp.ne.s32.totalorder %s330_s2, %s247_s10  ;;  %p251_p8 = scmp.lt.u32.totalorder %s247_s10, %s330_s2 }
 0x122   :  { %p253_p9 = pnand %p251_p8, %p248_p7 }
 0x124   :  { %256 = shalt.err (!%p253_p9)
}
 0x125   :  { %s270_s15 = smov 128   ;;  %s271_s16 = smov 8  }
 0x126   :  { %147 = dma.vmem_to_hbm [thread:$0]  %s142_s6, 256, %s330_s2, [#allocation4], %s270_s15, %s270_s15, %s271_s16  }
 0x127   :  { %261 = dma.done.wait [#allocation4], 256  }
 0x128   :  { %262 = vsyncadd [#allocation4], 4294967040 }
 0x129   :  { %151 = vsyncpa [#allocation3], 1 }
 0x12a   :  { %152 = vsyncpa [#allocation6], 1 }
 0x12b   :  { %153 = vsyncpa [#allocation4], 1 }

</bundles_post_ra>
